<compile_context>
chip_gen: v7x
topology: tpu7x:2x2x1
jax: 0.10.0
libtpu: 0.0.40
codegen_flags: <defaults>
</compile_context>

<pallas_src>
import jax
import jax.numpy as jnp
import numpy as np
from jax import lax
from jax.experimental import pallas as pl
from jax.experimental.pallas import tpu as pltpu


# ---------------------------------------------------------------------------
# Pallas GRU kernel (single invocation, whole sequence)
# ---------------------------------------------------------------------------
def gru_kernel(x_ref,       # (S*B, E)  embedded inputs, time-major flattened
               wir_ref,     # (E, H)    input->r gate weight (transposed)
               wiz_ref,     # (E, H)    input->z gate weight (transposed)
               win_ref,     # (E, H)    input->n gate weight (transposed)
               whr_ref,     # (H, H)    hidden->r gate weight (transposed)
               whz_ref,     # (H, H)    hidden->z gate weight (transposed)
               whn_ref,     # (H, H)    hidden->n gate weight (transposed)
               br_ref,      # (1, H)    b_ih[r] + b_hh[r]
               bz_ref,      # (1, H)    b_ih[z] + b_hh[z]
               bni_ref,     # (1, H)    b_ih[n]
               bnh_ref,     # (1, H)    b_hh[n]   (must stay inside r * (...))
               hid_ref,     # (B, H)    output: final hidden state
               gir_s,       # (S*B, H)  VMEM scratch: precomputed r-gate input term
               giz_s,       # (S*B, H)  VMEM scratch: precomputed z-gate input term
               gin_s):      # (S*B, H)  VMEM scratch: precomputed n-gate input term
    B, H = hid_ref.shape
    SB = x_ref.shape[0]
    S = SB // B

    x = x_ref[...]  # (S*B, E)

    # ---- prologue: hoisted input projection (outside the serial chain) ----
    gir_s[...] = jnp.dot(x, wir_ref[...],
                         preferred_element_type=jnp.float32) + br_ref[...]
    giz_s[...] = jnp.dot(x, wiz_ref[...],
                         preferred_element_type=jnp.float32) + bz_ref[...]
    gin_s[...] = jnp.dot(x, win_ref[...],
                         preferred_element_type=jnp.float32) + bni_ref[...]

    # loop-invariant loads, hoisted out of the recurrence
    whr = whr_ref[...]
    whz = whz_ref[...]
    whn = whn_ref[...]
    bnh = bnh_ref[...]

    # ---- serial recurrence: only h @ W_hh + gating per step ----
    def step(t, h):
        row = pl.multiple_of(t * B, B)
        gr = gir_s[pl.ds(row, B), :]
        gz = giz_s[pl.ds(row, B), :]
        gn = gin_s[pl.ds(row, B), :]
        hr = jnp.dot(h, whr, preferred_element_type=jnp.float32)
        hz = jnp.dot(h, whz, preferred_element_type=jnp.float32)
        hn = jnp.dot(h, whn, preferred_element_type=jnp.float32) + bnh
        r = jax.nn.sigmoid(gr + hr)
        z = jax.nn.sigmoid(gz + hz)
        n = jnp.tanh(gn + r * hn)
        return (1.0 - z) * n + z * h

    h0 = jnp.zeros((B, H), jnp.float32)
    h_last = lax.fori_loop(0, S, step, h0, unroll=True)  # S is small & static

    hid_ref[...] = h_last.astype(hid_ref.dtype)


def gru_final_hidden(embedded, w_ih, w_hh, b_ih, b_hh):
    """embedded: (S, B, E) f32.  Weights in PyTorch layout:
       w_ih (3H, E), w_hh (3H, H), b_ih (3H,), b_hh (3H,).  Gate order [r|z|n].
       Returns final hidden state (1, B, H)."""
    S, B, E = embedded.shape
    H = w_hh.shape[1]

    # glue: transpose + split weights per gate so every kernel matmul output
    # is its own lane-dense block (no 3H=96 slicing inside the serial loop)
    wi = jnp.transpose(w_ih)  # (E, 3H)
    wh = jnp.transpose(w_hh)  # (H, 3H)
    wir, wiz, win = wi[:, 0:H], wi[:, H:2 * H], wi[:, 2 * H:3 * H]
    whr, whz, whn = wh[:, 0:H], wh[:, H:2 * H], wh[:, 2 * H:3 * H]

    # fold biases: r/z gates take b_ih+b_hh up front; n gate splits into the
    # input part (b_ih) and the hidden part (b_hh) which stays inside r*(...)
    br = (b_ih[0:H] + b_hh[0:H]).reshape(1, H)
    bz = (b_ih[H:2 * H] + b_hh[H:2 * H]).reshape(1, H)
    bni = b_ih[2 * H:3 * H].reshape(1, H)
    bnh = b_hh[2 * H:3 * H].reshape(1, H)

    x2d = embedded.reshape(S * B, E)  # time-major flatten (free, done in XLA)

    vmem = pltpu.MemorySpace.VMEM
    h_last = pl.pallas_call(
        gru_kernel,
        out_shape=jax.ShapeDtypeStruct((B, H), jnp.float32),
        in_specs=[pl.BlockSpec(memory_space=vmem)] * 11,
        out_specs=pl.BlockSpec(memory_space=vmem),
        scratch_shapes=[
            pltpu.VMEM((S * B, H), jnp.float32),
            pltpu.VMEM((S * B, H), jnp.float32),
            pltpu.VMEM((S * B, H), jnp.float32),
        ],
    )(x2d, wir, wiz, win, whr, whz, whn, br, bz, bni, bnh)

    return h_last[None]  # (1, B, H)


# ---------------------------------------------------------------------------
# Encoder forward (embedding lookup + dropout(identity) + Pallas GRU)
# ---------------------------------------------------------------------------
def encoder_forward(src, params):
    # src: (S, B) int32 token ids
    emb_table = params["embedding"]                  # (V, E)
    # TODO(synk): embedding gather kept as XLA glue (could be fused via
    #             scalar-prefetch / DMA gather at larger scales).
    embedded = jnp.take(emb_table, src, axis=0)      # (S, B, E)
    # TODO(synk): dropout implemented as identity (eval-mode semantics).
    return gru_final_hidden(embedded,
                            params["w_ih"], params["w_hh"],
                            params["b_ih"], params["b_hh"])


# Pure-JAX reference (lax.scan) for correctness check — same default precision
def encoder_reference(src, params):
    emb = jnp.take(params["embedding"], src, axis=0)  # (S, B, E)
    H = params["w_hh"].shape[1]
    wi = jnp.transpose(params["w_ih"])
    wh = jnp.transpose(params["w_hh"])
    bi = params["b_ih"]
    bh = params["b_hh"]

    def step(h, x):
        gi = jnp.dot(x, wi, preferred_element_type=jnp.float32) + bi
        gh = jnp.dot(h, wh, preferred_element_type=jnp.float32) + bh
        r = jax.nn.sigmoid(gi[:, :H] + gh[:, :H])
        z = jax.nn.sigmoid(gi[:, H:2 * H] + gh[:, H:2 * H])
        n = jnp.tanh(gi[:, 2 * H:] + r * gh[:, 2 * H:])
        h_new = (1.0 - z) * n + z * h
        return h_new, None

    h0 = jnp.zeros((src.shape[1], H), jnp.float32)
    h_last, _ = jax.lax.scan(step, h0, emb)
    return h_last[None]


if __name__ == "__main__":
    # Small deterministic config
    INPUT_DIM = 50     # vocab size
    EMB_DIM = 32
    HID_DIM = 32
    SEQ_LEN = 8
    BATCH = 2

    key = jax.random.PRNGKey(0)
    k_emb, k_wih, k_whh, k_bih, k_bhh, k_src = jax.random.split(key, 6)

    bound = 1.0 / np.sqrt(HID_DIM)   # PyTorch GRU init range
    params = {
        "embedding": jax.random.normal(k_emb, (INPUT_DIM, EMB_DIM), jnp.float32),
        "w_ih": jax.random.uniform(k_wih, (3 * HID_DIM, EMB_DIM), jnp.float32,
                                   -bound, bound),
        "w_hh": jax.random.uniform(k_whh, (3 * HID_DIM, HID_DIM), jnp.float32,
                                   -bound, bound),
        "b_ih": jax.random.uniform(k_bih, (3 * HID_DIM,), jnp.float32,
                                   -bound, bound),
        "b_hh": jax.random.uniform(k_bhh, (3 * HID_DIM,), jnp.float32,
                                   -bound, bound),
    }

    src = jax.random.randint(k_src, (SEQ_LEN, BATCH), 0, INPUT_DIM, jnp.int32)

    hidden = jax.block_until_ready(encoder_forward(src, params))
    ref = jax.block_until_ready(encoder_reference(src, params))

    assert hidden.shape == (1, BATCH, HID_DIM)
    # default (non-HIGHEST) MXU precision on both sides -> loosened tolerance
    np.testing.assert_allclose(np.asarray(hidden), np.asarray(ref),
                               rtol=2e-2, atol=2e-2)
    print("KERNEL_OK")
</pallas_src>

<mosaic_0001>
module attributes {stable_mosaic.version = 11 : i64} {
  func.func @gru_kernel(%arg0: memref<16x32xf32, #tpu.memory_space<vmem>>, %arg1: memref<32x32xf32, #tpu.memory_space<vmem>>, %arg2: memref<32x32xf32, #tpu.memory_space<vmem>>, %arg3: memref<32x32xf32, #tpu.memory_space<vmem>>, %arg4: memref<32x32xf32, #tpu.memory_space<vmem>>, %arg5: memref<32x32xf32, #tpu.memory_space<vmem>>, %arg6: memref<32x32xf32, #tpu.memory_space<vmem>>, %arg7: memref<1x32xf32, #tpu.memory_space<vmem>>, %arg8: memref<1x32xf32, #tpu.memory_space<vmem>>, %arg9: memref<1x32xf32, #tpu.memory_space<vmem>>, %arg10: memref<1x32xf32, #tpu.memory_space<vmem>>, %arg11: memref<2x32xf32, #tpu.memory_space<vmem>>, %arg12: memref<16x32xf32, #tpu.memory_space<vmem>>, %arg13: memref<16x32xf32, #tpu.memory_space<vmem>>, %arg14: memref<16x32xf32, #tpu.memory_space<vmem>>) attributes {dimension_semantics = [], scalar_prefetch = 0 : i64, scratch_operands = 3 : i64, tpu.core_type = #tpu.core_type<tc>} {
    %c0 = arith.constant 0 : index
    %c0_0 = arith.constant 0 : index
    %0 = vector.load %arg0[%c0, %c0_0] : memref<16x32xf32, #tpu.memory_space<vmem>>, vector<16x32xf32>
    %c0_1 = arith.constant 0 : index
    %c0_2 = arith.constant 0 : index
    %1 = vector.load %arg1[%c0_1, %c0_2] : memref<32x32xf32, #tpu.memory_space<vmem>>, vector<32x32xf32>
    %cst = arith.constant dense<0.000000e+00> : vector<16x32xf32>
    %2 = tpu.matmul %0, %1, %cst {dimension_numbers = #tpu.dot_dimension_numbers<[1], [0], [0], [1], [0, 0, 1, 1], [], []>} : vector<16x32xf32>, vector<32x32xf32>, vector<16x32xf32> -> vector<16x32xf32>
    %c0_3 = arith.constant 0 : index
    %c0_4 = arith.constant 0 : index
    %3 = vector.load %arg7[%c0_3, %c0_4] : memref<1x32xf32, #tpu.memory_space<vmem>>, vector<1x32xf32>
    %4 = vector.broadcast %3 : vector<1x32xf32> to vector<16x32xf32>
    %5 = arith.addf %2, %4 : vector<16x32xf32>
    %c0_5 = arith.constant 0 : index
    %c0_6 = arith.constant 0 : index
    %6 = vector.load %arg12[%c0_5, %c0_6] : memref<16x32xf32, #tpu.memory_space<vmem>>, vector<16x32xf32>
    tpu.vector_store %arg12[%c0_5, %c0_6], %5 {strides = array<i32>} : memref<16x32xf32, #tpu.memory_space<vmem>>, vector<16x32xf32>,
    %c0_7 = arith.constant 0 : index
    %c0_8 = arith.constant 0 : index
    %7 = vector.load %arg2[%c0_7, %c0_8] : memref<32x32xf32, #tpu.memory_space<vmem>>, vector<32x32xf32>
    %cst_9 = arith.constant dense<0.000000e+00> : vector<16x32xf32>
    %8 = tpu.matmul %0, %7, %cst_9 {dimension_numbers = #tpu.dot_dimension_numbers<[1], [0], [0], [1], [0, 0, 1, 1], [], []>} : vector<16x32xf32>, vector<32x32xf32>, vector<16x32xf32> -> vector<16x32xf32>
    %c0_10 = arith.constant 0 : index
    %c0_11 = arith.constant 0 : index
    %9 = vector.load %arg8[%c0_10, %c0_11] : memref<1x32xf32, #tpu.memory_space<vmem>>, vector<1x32xf32>
    %10 = vector.broadcast %9 : vector<1x32xf32> to vector<16x32xf32>
    %11 = arith.addf %8, %10 : vector<16x32xf32>
    %c0_12 = arith.constant 0 : index
    %c0_13 = arith.constant 0 : index
    %12 = vector.load %arg13[%c0_12, %c0_13] : memref<16x32xf32, #tpu.memory_space<vmem>>, vector<16x32xf32>
    tpu.vector_store %arg13[%c0_12, %c0_13], %11 {strides = array<i32>} : memref<16x32xf32, #tpu.memory_space<vmem>>, vector<16x32xf32>,
    %c0_14 = arith.constant 0 : index
    %c0_15 = arith.constant 0 : index
    %13 = vector.load %arg3[%c0_14, %c0_15] : memref<32x32xf32, #tpu.memory_space<vmem>>, vector<32x32xf32>
    %cst_16 = arith.constant dense<0.000000e+00> : vector<16x32xf32>
    %14 = tpu.matmul %0, %13, %cst_16 {dimension_numbers = #tpu.dot_dimension_numbers<[1], [0], [0], [1], [0, 0, 1, 1], [], []>} : vector<16x32xf32>, vector<32x32xf32>, vector<16x32xf32> -> vector<16x32xf32>
    %c0_17 = arith.constant 0 : index
    %c0_18 = arith.constant 0 : index
    %15 = vector.load %arg9[%c0_17, %c0_18] : memref<1x32xf32, #tpu.memory_space<vmem>>, vector<1x32xf32>
    %16 = vector.broadcast %15 : vector<1x32xf32> to vector<16x32xf32>
    %17 = arith.addf %14, %16 : vector<16x32xf32>
    %c0_19 = arith.constant 0 : index
    %c0_20 = arith.constant 0 : index
    %18 = vector.load %arg14[%c0_19, %c0_20] : memref<16x32xf32, #tpu.memory_space<vmem>>, vector<16x32xf32>
    tpu.vector_store %arg14[%c0_19, %c0_20], %17 {strides = array<i32>} : memref<16x32xf32, #tpu.memory_space<vmem>>, vector<16x32xf32>,
    %c0_21 = arith.constant 0 : index
    %c0_22 = arith.constant 0 : index
    %19 = vector.load %arg4[%c0_21, %c0_22] : memref<32x32xf32, #tpu.memory_space<vmem>>, vector<32x32xf32>
    %c0_23 = arith.constant 0 : index
    %c0_24 = arith.constant 0 : index
    %20 = vector.load %arg5[%c0_23, %c0_24] : memref<32x32xf32, #tpu.memory_space<vmem>>, vector<32x32xf32>
    %c0_25 = arith.constant 0 : index
    %c0_26 = arith.constant 0 : index
    %21 = vector.load %arg6[%c0_25, %c0_26] : memref<32x32xf32, #tpu.memory_space<vmem>>, vector<32x32xf32>
    %c0_27 = arith.constant 0 : index
    %c0_28 = arith.constant 0 : index
    %22 = vector.load %arg10[%c0_27, %c0_28] : memref<1x32xf32, #tpu.memory_space<vmem>>, vector<1x32xf32>
    %cst_29 = arith.constant 0.000000e+00 : f32
    %23 = vector.broadcast %cst_29 : f32 to vector<2x32xf32>
    %c0_i32 = arith.constant 0 : i32
    %c2_i32 = arith.constant 2 : i32
    %24 = arith.muli %c0_i32, %c2_i32 : i32
    %25 = tpu.assume_multiple %24, 2 : i32
    %26 = arith.index_cast %25 : i32 to index
    %c0_30 = arith.constant 0 : index
    %27 = vector.load %arg12[%26, %c0_30] : memref<16x32xf32, #tpu.memory_space<vmem>>, vector<2x32xf32>
    %28 = arith.index_cast %25 : i32 to index
    %c0_31 = arith.constant 0 : index
    %29 = vector.load %arg13[%28, %c0_31] : memref<16x32xf32, #tpu.memory_space<vmem>>, vector<2x32xf32>
    %30 = arith.index_cast %25 : i32 to index
    %c0_32 = arith.constant 0 : index
    %31 = vector.load %arg14[%30, %c0_32] : memref<16x32xf32, #tpu.memory_space<vmem>>, vector<2x32xf32>
    %cst_33 = arith.constant dense<0.000000e+00> : vector<2x32xf32>
    %32 = tpu.matmul %23, %19, %cst_33 {dimension_numbers = #tpu.dot_dimension_numbers<[1], [0], [0], [1], [0, 0, 1, 1], [], []>} : vector<2x32xf32>, vector<32x32xf32>, vector<2x32xf32> -> vector<2x32xf32>
    %cst_34 = arith.constant dense<0.000000e+00> : vector<2x32xf32>
    %33 = tpu.matmul %23, %20, %cst_34 {dimension_numbers = #tpu.dot_dimension_numbers<[1], [0], [0], [1], [0, 0, 1, 1], [], []>} : vector<2x32xf32>, vector<32x32xf32>, vector<2x32xf32> -> vector<2x32xf32>
    %cst_35 = arith.constant dense<0.000000e+00> : vector<2x32xf32>
    %34 = tpu.matmul %23, %21, %cst_35 {dimension_numbers = #tpu.dot_dimension_numbers<[1], [0], [0], [1], [0, 0, 1, 1], [], []>} : vector<2x32xf32>, vector<32x32xf32>, vector<2x32xf32> -> vector<2x32xf32>
    %35 = vector.broadcast %22 : vector<1x32xf32> to vector<2x32xf32>
    %36 = arith.addf %34, %35 : vector<2x32xf32>
    %37 = arith.addf %27, %32 : vector<2x32xf32>
    %38 = arith.negf %37 : vector<2x32xf32>
    %39 = math.exp %38 : vector<2x32xf32>
    %cst_36 = arith.constant 1.000000e+00 : f32
    %40 = vector.broadcast %cst_36 : f32 to vector<2x32xf32>
    %41 = arith.addf %40, %39 : vector<2x32xf32>
    %42 = arith.divf %40, %41 : vector<2x32xf32>
    %43 = arith.addf %29, %33 : vector<2x32xf32>
    %44 = arith.negf %43 : vector<2x32xf32>
    %45 = math.exp %44 : vector<2x32xf32>
    %cst_37 = arith.constant 1.000000e+00 : f32
    %46 = vector.broadcast %cst_37 : f32 to vector<2x32xf32>
    %47 = arith.addf %46, %45 : vector<2x32xf32>
    %48 = arith.divf %46, %47 : vector<2x32xf32>
    %49 = arith.mulf %42, %36 : vector<2x32xf32>
    %50 = arith.addf %31, %49 : vector<2x32xf32>
    %51 = math.tanh %50 : vector<2x32xf32>
    %cst_38 = arith.constant 1.000000e+00 : f32
    %52 = vector.broadcast %cst_38 : f32 to vector<2x32xf32>
    %53 = arith.subf %52, %48 : vector<2x32xf32>
    %54 = arith.mulf %53, %51 : vector<2x32xf32>
    %55 = arith.mulf %48, %23 : vector<2x32xf32>
    %56 = arith.addf %54, %55 : vector<2x32xf32>
    %c1_i32 = arith.constant 1 : i32
    %c2_i32_39 = arith.constant 2 : i32
    %57 = arith.muli %c1_i32, %c2_i32_39 : i32
    %58 = tpu.assume_multiple %57, 2 : i32
    %59 = arith.index_cast %58 : i32 to index
    %c0_40 = arith.constant 0 : index
    %60 = vector.load %arg12[%59, %c0_40] : memref<16x32xf32, #tpu.memory_space<vmem>>, vector<2x32xf32>
    %61 = arith.index_cast %58 : i32 to index
    %c0_41 = arith.constant 0 : index
    %62 = vector.load %arg13[%61, %c0_41] : memref<16x32xf32, #tpu.memory_space<vmem>>, vector<2x32xf32>
    %63 = arith.index_cast %58 : i32 to index
    %c0_42 = arith.constant 0 : index
    %64 = vector.load %arg14[%63, %c0_42] : memref<16x32xf32, #tpu.memory_space<vmem>>, vector<2x32xf32>
    %cst_43 = arith.constant dense<0.000000e+00> : vector<2x32xf32>
    %65 = tpu.matmul %56, %19, %cst_43 {dimension_numbers = #tpu.dot_dimension_numbers<[1], [0], [0], [1], [0, 0, 1, 1], [], []>} : vector<2x32xf32>, vector<32x32xf32>, vector<2x32xf32> -> vector<2x32xf32>
    %cst_44 = arith.constant dense<0.000000e+00> : vector<2x32xf32>
    %66 = tpu.matmul %56, %20, %cst_44 {dimension_numbers = #tpu.dot_dimension_numbers<[1], [0], [0], [1], [0, 0, 1, 1], [], []>} : vector<2x32xf32>, vector<32x32xf32>, vector<2x32xf32> -> vector<2x32xf32>
    %cst_45 = arith.constant dense<0.000000e+00> : vector<2x32xf32>
    %67 = tpu.matmul %56, %21, %cst_45 {dimension_numbers = #tpu.dot_dimension_numbers<[1], [0], [0], [1], [0, 0, 1, 1], [], []>} : vector<2x32xf32>, vector<32x32xf32>, vector<2x32xf32> -> vector<2x32xf32>
    %68 = vector.broadcast %22 : vector<1x32xf32> to vector<2x32xf32>
    %69 = arith.addf %67, %68 : vector<2x32xf32>
    %70 = arith.addf %60, %65 : vector<2x32xf32>
    %71 = arith.negf %70 : vector<2x32xf32>
    %72 = math.exp %71 : vector<2x32xf32>
    %cst_46 = arith.constant 1.000000e+00 : f32
    %73 = vector.broadcast %cst_46 : f32 to vector<2x32xf32>
    %74 = arith.addf %73, %72 : vector<2x32xf32>
    %75 = arith.divf %73, %74 : vector<2x32xf32>
    %76 = arith.addf %62, %66 : vector<2x32xf32>
    %77 = arith.negf %76 : vector<2x32xf32>
    %78 = math.exp %77 : vector<2x32xf32>
    %cst_47 = arith.constant 1.000000e+00 : f32
    %79 = vector.broadcast %cst_47 : f32 to vector<2x32xf32>
    %80 = arith.addf %79, %78 : vector<2x32xf32>
    %81 = arith.divf %79, %80 : vector<2x32xf32>
    %82 = arith.mulf %75, %69 : vector<2x32xf32>
    %83 = arith.addf %64, %82 : vector<2x32xf32>
    %84 = math.tanh %83 : vector<2x32xf32>
    %cst_48 = arith.constant 1.000000e+00 : f32
    %85 = vector.broadcast %cst_48 : f32 to vector<2x32xf32>
    %86 = arith.subf %85, %81 : vector<2x32xf32>
    %87 = arith.mulf %86, %84 : vector<2x32xf32>
    %88 = arith.mulf %81, %56 : vector<2x32xf32>
    %89 = arith.addf %87, %88 : vector<2x32xf32>
    %c2_i32_49 = arith.constant 2 : i32
    %c2_i32_50 = arith.constant 2 : i32
    %90 = arith.muli %c2_i32_49, %c2_i32_50 : i32
    %91 = tpu.assume_multiple %90, 2 : i32
    %92 = arith.index_cast %91 : i32 to index
    %c0_51 = arith.constant 0 : index
    %93 = vector.load %arg12[%92, %c0_51] : memref<16x32xf32, #tpu.memory_space<vmem>>, vector<2x32xf32>
    %94 = arith.index_cast %91 : i32 to index
    %c0_52 = arith.constant 0 : index
    %95 = vector.load %arg13[%94, %c0_52] : memref<16x32xf32, #tpu.memory_space<vmem>>, vector<2x32xf32>
    %96 = arith.index_cast %91 : i32 to index
    %c0_53 = arith.constant 0 : index
    %97 = vector.load %arg14[%96, %c0_53] : memref<16x32xf32, #tpu.memory_space<vmem>>, vector<2x32xf32>
    %cst_54 = arith.constant dense<0.000000e+00> : vector<2x32xf32>
    %98 = tpu.matmul %89, %19, %cst_54 {dimension_numbers = #tpu.dot_dimension_numbers<[1], [0], [0], [1], [0, 0, 1, 1], [], []>} : vector<2x32xf32>, vector<32x32xf32>, vector<2x32xf32> -> vector<2x32xf32>
    %cst_55 = arith.constant dense<0.000000e+00> : vector<2x32xf32>
    %99 = tpu.matmul %89, %20, %cst_55 {dimension_numbers = #tpu.dot_dimension_numbers<[1], [0], [0], [1], [0, 0, 1, 1], [], []>} : vector<2x32xf32>, vector<32x32xf32>, vector<2x32xf32> -> vector<2x32xf32>
    %cst_56 = arith.constant dense<0.000000e+00> : vector<2x32xf32>
    %100 = tpu.matmul %89, %21, %cst_56 {dimension_numbers = #tpu.dot_dimension_numbers<[1], [0], [0], [1], [0, 0, 1, 1], [], []>} : vector<2x32xf32>, vector<32x32xf32>, vector<2x32xf32> -> vector<2x32xf32>
    %101 = vector.broadcast %22 : vector<1x32xf32> to vector<2x32xf32>
    %102 = arith.addf %100, %101 : vector<2x32xf32>
    %103 = arith.addf %93, %98 : vector<2x32xf32>
    %104 = arith.negf %103 : vector<2x32xf32>
    %105 = math.exp %104 : vector<2x32xf32>
    %cst_57 = arith.constant 1.000000e+00 : f32
    %106 = vector.broadcast %cst_57 : f32 to vector<2x32xf32>
    %107 = arith.addf %106, %105 : vector<2x32xf32>
    %108 = arith.divf %106, %107 : vector<2x32xf32>
    %109 = arith.addf %95, %99 : vector<2x32xf32>
    %110 = arith.negf %109 : vector<2x32xf32>
    %111 = math.exp %110 : vector<2x32xf32>
    %cst_58 = arith.constant 1.000000e+00 : f32
    %112 = vector.broadcast %cst_58 : f32 to vector<2x32xf32>
    %113 = arith.addf %112, %111 : vector<2x32xf32>
    %114 = arith.divf %112, %113 : vector<2x32xf32>
    %115 = arith.mulf %108, %102 : vector<2x32xf32>
    %116 = arith.addf %97, %115 : vector<2x32xf32>
    %117 = math.tanh %116 : vector<2x32xf32>
    %cst_59 = arith.constant 1.000000e+00 : f32
    %118 = vector.broadcast %cst_59 : f32 to vector<2x32xf32>
    %119 = arith.subf %118, %114 : vector<2x32xf32>
    %120 = arith.mulf %119, %117 : vector<2x32xf32>
    %121 = arith.mulf %114, %89 : vector<2x32xf32>
    %122 = arith.addf %120, %121 : vector<2x32xf32>
    %c3_i32 = arith.constant 3 : i32
    %c2_i32_60 = arith.constant 2 : i32
    %123 = arith.muli %c3_i32, %c2_i32_60 : i32
    %124 = tpu.assume_multiple %123, 2 : i32
    %125 = arith.index_cast %124 : i32 to index
    %c0_61 = arith.constant 0 : index
    %126 = vector.load %arg12[%125, %c0_61] : memref<16x32xf32, #tpu.memory_space<vmem>>, vector<2x32xf32>
    %127 = arith.index_cast %124 : i32 to index
    %c0_62 = arith.constant 0 : index
    %128 = vector.load %arg13[%127, %c0_62] : memref<16x32xf32, #tpu.memory_space<vmem>>, vector<2x32xf32>
    %129 = arith.index_cast %124 : i32 to index
    %c0_63 = arith.constant 0 : index
    %130 = vector.load %arg14[%129, %c0_63] : memref<16x32xf32, #tpu.memory_space<vmem>>, vector<2x32xf32>
    %cst_64 = arith.constant dense<0.000000e+00> : vector<2x32xf32>
    %131 = tpu.matmul %122, %19, %cst_64 {dimension_numbers = #tpu.dot_dimension_numbers<[1], [0], [0], [1], [0, 0, 1, 1], [], []>} : vector<2x32xf32>, vector<32x32xf32>, vector<2x32xf32> -> vector<2x32xf32>
    %cst_65 = arith.constant dense<0.000000e+00> : vector<2x32xf32>
    %132 = tpu.matmul %122, %20, %cst_65 {dimension_numbers = #tpu.dot_dimension_numbers<[1], [0], [0], [1], [0, 0, 1, 1], [], []>} : vector<2x32xf32>, vector<32x32xf32>, vector<2x32xf32> -> vector<2x32xf32>
    %cst_66 = arith.constant dense<0.000000e+00> : vector<2x32xf32>
    %133 = tpu.matmul %122, %21, %cst_66 {dimension_numbers = #tpu.dot_dimension_numbers<[1], [0], [0], [1], [0, 0, 1, 1], [], []>} : vector<2x32xf32>, vector<32x32xf32>, vector<2x32xf32> -> vector<2x32xf32>
    %134 = vector.broadcast %22 : vector<1x32xf32> to vector<2x32xf32>
    %135 = arith.addf %133, %134 : vector<2x32xf32>
    %136 = arith.addf %126, %131 : vector<2x32xf32>
    %137 = arith.negf %136 : vector<2x32xf32>
    %138 = math.exp %137 : vector<2x32xf32>
    %cst_67 = arith.constant 1.000000e+00 : f32
    %139 = vector.broadcast %cst_67 : f32 to vector<2x32xf32>
    %140 = arith.addf %139, %138 : vector<2x32xf32>
    %141 = arith.divf %139, %140 : vector<2x32xf32>
    %142 = arith.addf %128, %132 : vector<2x32xf32>
    %143 = arith.negf %142 : vector<2x32xf32>
    %144 = math.exp %143 : vector<2x32xf32>
    %cst_68 = arith.constant 1.000000e+00 : f32
    %145 = vector.broadcast %cst_68 : f32 to vector<2x32xf32>
    %146 = arith.addf %145, %144 : vector<2x32xf32>
    %147 = arith.divf %145, %146 : vector<2x32xf32>
    %148 = arith.mulf %141, %135 : vector<2x32xf32>
    %149 = arith.addf %130, %148 : vector<2x32xf32>
    %150 = math.tanh %149 : vector<2x32xf32>
    %cst_69 = arith.constant 1.000000e+00 : f32
    %151 = vector.broadcast %cst_69 : f32 to vector<2x32xf32>
    %152 = arith.subf %151, %147 : vector<2x32xf32>
    %153 = arith.mulf %152, %150 : vector<2x32xf32>
    %154 = arith.mulf %147, %122 : vector<2x32xf32>
    %155 = arith.addf %153, %154 : vector<2x32xf32>
    %c4_i32 = arith.constant 4 : i32
    %c2_i32_70 = arith.constant 2 : i32
    %156 = arith.muli %c4_i32, %c2_i32_70 : i32
    %157 = tpu.assume_multiple %156, 2 : i32
    %158 = arith.index_cast %157 : i32 to index
    %c0_71 = arith.constant 0 : index
    %159 = vector.load %arg12[%158, %c0_71] : memref<16x32xf32, #tpu.memory_space<vmem>>, vector<2x32xf32>
    %160 = arith.index_cast %157 : i32 to index
    %c0_72 = arith.constant 0 : index
    %161 = vector.load %arg13[%160, %c0_72] : memref<16x32xf32, #tpu.memory_space<vmem>>, vector<2x32xf32>
    %162 = arith.index_cast %157 : i32 to index
    %c0_73 = arith.constant 0 : index
    %163 = vector.load %arg14[%162, %c0_73] : memref<16x32xf32, #tpu.memory_space<vmem>>, vector<2x32xf32>
    %cst_74 = arith.constant dense<0.000000e+00> : vector<2x32xf32>
    %164 = tpu.matmul %155, %19, %cst_74 {dimension_numbers = #tpu.dot_dimension_numbers<[1], [0], [0], [1], [0, 0, 1, 1], [], []>} : vector<2x32xf32>, vector<32x32xf32>, vector<2x32xf32> -> vector<2x32xf32>
    %cst_75 = arith.constant dense<0.000000e+00> : vector<2x32xf32>
    %165 = tpu.matmul %155, %20, %cst_75 {dimension_numbers = #tpu.dot_dimension_numbers<[1], [0], [0], [1], [0, 0, 1, 1], [], []>} : vector<2x32xf32>, vector<32x32xf32>, vector<2x32xf32> -> vector<2x32xf32>
    %cst_76 = arith.constant dense<0.000000e+00> : vector<2x32xf32>
    %166 = tpu.matmul %155, %21, %cst_76 {dimension_numbers = #tpu.dot_dimension_numbers<[1], [0], [0], [1], [0, 0, 1, 1], [], []>} : vector<2x32xf32>, vector<32x32xf32>, vector<2x32xf32> -> vector<2x32xf32>
    %167 = vector.broadcast %22 : vector<1x32xf32> to vector<2x32xf32>
    %168 = arith.addf %166, %167 : vector<2x32xf32>
    %169 = arith.addf %159, %164 : vector<2x32xf32>
    %170 = arith.negf %169 : vector<2x32xf32>
    %171 = math.exp %170 : vector<2x32xf32>
    %cst_77 = arith.constant 1.000000e+00 : f32
    %172 = vector.broadcast %cst_77 : f32 to vector<2x32xf32>
    %173 = arith.addf %172, %171 : vector<2x32xf32>
    %174 = arith.divf %172, %173 : vector<2x32xf32>
    %175 = arith.addf %161, %165 : vector<2x32xf32>
    %176 = arith.negf %175 : vector<2x32xf32>
    %177 = math.exp %176 : vector<2x32xf32>
    %cst_78 = arith.constant 1.000000e+00 : f32
    %178 = vector.broadcast %cst_78 : f32 to vector<2x32xf32>
    %179 = arith.addf %178, %177 : vector<2x32xf32>
    %180 = arith.divf %178, %179 : vector<2x32xf32>
    %181 = arith.mulf %174, %168 : vector<2x32xf32>
    %182 = arith.addf %163, %181 : vector<2x32xf32>
    %183 = math.tanh %182 : vector<2x32xf32>
    %cst_79 = arith.constant 1.000000e+00 : f32
    %184 = vector.broadcast %cst_79 : f32 to vector<2x32xf32>
    %185 = arith.subf %184, %180 : vector<2x32xf32>
    %186 = arith.mulf %185, %183 : vector<2x32xf32>
    %187 = arith.mulf %180, %155 : vector<2x32xf32>
    %188 = arith.addf %186, %187 : vector<2x32xf32>
    %c5_i32 = arith.constant 5 : i32
    %c2_i32_80 = arith.constant 2 : i32
    %189 = arith.muli %c5_i32, %c2_i32_80 : i32
    %190 = tpu.assume_multiple %189, 2 : i32
    %191 = arith.index_cast %190 : i32 to index
    %c0_81 = arith.constant 0 : index
    %192 = vector.load %arg12[%191, %c0_81] : memref<16x32xf32, #tpu.memory_space<vmem>>, vector<2x32xf32>
    %193 = arith.index_cast %190 : i32 to index
    %c0_82 = arith.constant 0 : index
    %194 = vector.load %arg13[%193, %c0_82] : memref<16x32xf32, #tpu.memory_space<vmem>>, vector<2x32xf32>
    %195 = arith.index_cast %190 : i32 to index
    %c0_83 = arith.constant 0 : index
    %196 = vector.load %arg14[%195, %c0_83] : memref<16x32xf32, #tpu.memory_space<vmem>>, vector<2x32xf32>
    %cst_84 = arith.constant dense<0.000000e+00> : vector<2x32xf32>
    %197 = tpu.matmul %188, %19, %cst_84 {dimension_numbers = #tpu.dot_dimension_numbers<[1], [0], [0], [1], [0, 0, 1, 1], [], []>} : vector<2x32xf32>, vector<32x32xf32>, vector<2x32xf32> -> vector<2x32xf32>
    %cst_85 = arith.constant dense<0.000000e+00> : vector<2x32xf32>
    %198 = tpu.matmul %188, %20, %cst_85 {dimension_numbers = #tpu.dot_dimension_numbers<[1], [0], [0], [1], [0, 0, 1, 1], [], []>} : vector<2x32xf32>, vector<32x32xf32>, vector<2x32xf32> -> vector<2x32xf32>
    %cst_86 = arith.constant dense<0.000000e+00> : vector<2x32xf32>
    %199 = tpu.matmul %188, %21, %cst_86 {dimension_numbers = #tpu.dot_dimension_numbers<[1], [0], [0], [1], [0, 0, 1, 1], [], []>} : vector<2x32xf32>, vector<32x32xf32>, vector<2x32xf32> -> vector<2x32xf32>
    %200 = vector.broadcast %22 : vector<1x32xf32> to vector<2x32xf32>
    %201 = arith.addf %199, %200 : vector<2x32xf32>
    %202 = arith.addf %192, %197 : vector<2x32xf32>
    %203 = arith.negf %202 : vector<2x32xf32>
    %204 = math.exp %203 : vector<2x32xf32>
    %cst_87 = arith.constant 1.000000e+00 : f32
    %205 = vector.broadcast %cst_87 : f32 to vector<2x32xf32>
    %206 = arith.addf %205, %204 : vector<2x32xf32>
    %207 = arith.divf %205, %206 : vector<2x32xf32>
    %208 = arith.addf %194, %198 : vector<2x32xf32>
    %209 = arith.negf %208 : vector<2x32xf32>
    %210 = math.exp %209 : vector<2x32xf32>
    %cst_88 = arith.constant 1.000000e+00 : f32
    %211 = vector.broadcast %cst_88 : f32 to vector<2x32xf32>
    %212 = arith.addf %211, %210 : vector<2x32xf32>
    %213 = arith.divf %211, %212 : vector<2x32xf32>
    %214 = arith.mulf %207, %201 : vector<2x32xf32>
    %215 = arith.addf %196, %214 : vector<2x32xf32>
    %216 = math.tanh %215 : vector<2x32xf32>
    %cst_89 = arith.constant 1.000000e+00 : f32
    %217 = vector.broadcast %cst_89 : f32 to vector<2x32xf32>
    %218 = arith.subf %217, %213 : vector<2x32xf32>
    %219 = arith.mulf %218, %216 : vector<2x32xf32>
    %220 = arith.mulf %213, %188 : vector<2x32xf32>
    %221 = arith.addf %219, %220 : vector<2x32xf32>
    %c6_i32 = arith.constant 6 : i32
    %c2_i32_90 = arith.constant 2 : i32
    %222 = arith.muli %c6_i32, %c2_i32_90 : i32
    %223 = tpu.assume_multiple %222, 2 : i32
    %224 = arith.index_cast %223 : i32 to index
    %c0_91 = arith.constant 0 : index
    %225 = vector.load %arg12[%224, %c0_91] : memref<16x32xf32, #tpu.memory_space<vmem>>, vector<2x32xf32>
    %226 = arith.index_cast %223 : i32 to index
    %c0_92 = arith.constant 0 : index
    %227 = vector.load %arg13[%226, %c0_92] : memref<16x32xf32, #tpu.memory_space<vmem>>, vector<2x32xf32>
    %228 = arith.index_cast %223 : i32 to index
    %c0_93 = arith.constant 0 : index
    %229 = vector.load %arg14[%228, %c0_93] : memref<16x32xf32, #tpu.memory_space<vmem>>, vector<2x32xf32>
    %cst_94 = arith.constant dense<0.000000e+00> : vector<2x32xf32>
    %230 = tpu.matmul %221, %19, %cst_94 {dimension_numbers = #tpu.dot_dimension_numbers<[1], [0], [0], [1], [0, 0, 1, 1], [], []>} : vector<2x32xf32>, vector<32x32xf32>, vector<2x32xf32> -> vector<2x32xf32>
    %cst_95 = arith.constant dense<0.000000e+00> : vector<2x32xf32>
    %231 = tpu.matmul %221, %20, %cst_95 {dimension_numbers = #tpu.dot_dimension_numbers<[1], [0], [0], [1], [0, 0, 1, 1], [], []>} : vector<2x32xf32>, vector<32x32xf32>, vector<2x32xf32> -> vector<2x32xf32>
    %cst_96 = arith.constant dense<0.000000e+00> : vector<2x32xf32>
    %232 = tpu.matmul %221, %21, %cst_96 {dimension_numbers = #tpu.dot_dimension_numbers<[1], [0], [0], [1], [0, 0, 1, 1], [], []>} : vector<2x32xf32>, vector<32x32xf32>, vector<2x32xf32> -> vector<2x32xf32>
    %233 = vector.broadcast %22 : vector<1x32xf32> to vector<2x32xf32>
    %234 = arith.addf %232, %233 : vector<2x32xf32>
    %235 = arith.addf %225, %230 : vector<2x32xf32>
    %236 = arith.negf %235 : vector<2x32xf32>
    %237 = math.exp %236 : vector<2x32xf32>
    %cst_97 = arith.constant 1.000000e+00 : f32
    %238 = vector.broadcast %cst_97 : f32 to vector<2x32xf32>
    %239 = arith.addf %238, %237 : vector<2x32xf32>
    %240 = arith.divf %238, %239 : vector<2x32xf32>
    %241 = arith.addf %227, %231 : vector<2x32xf32>
    %242 = arith.negf %241 : vector<2x32xf32>
    %243 = math.exp %242 : vector<2x32xf32>
    %cst_98 = arith.constant 1.000000e+00 : f32
    %244 = vector.broadcast %cst_98 : f32 to vector<2x32xf32>
    %245 = arith.addf %244, %243 : vector<2x32xf32>
    %246 = arith.divf %244, %245 : vector<2x32xf32>
    %247 = arith.mulf %240, %234 : vector<2x32xf32>
    %248 = arith.addf %229, %247 : vector<2x32xf32>
    %249 = math.tanh %248 : vector<2x32xf32>
    %cst_99 = arith.constant 1.000000e+00 : f32
    %250 = vector.broadcast %cst_99 : f32 to vector<2x32xf32>
    %251 = arith.subf %250, %246 : vector<2x32xf32>
    %252 = arith.mulf %251, %249 : vector<2x32xf32>
    %253 = arith.mulf %246, %221 : vector<2x32xf32>
    %254 = arith.addf %252, %253 : vector<2x32xf32>
    %c7_i32 = arith.constant 7 : i32
    %c2_i32_100 = arith.constant 2 : i32
    %255 = arith.muli %c7_i32, %c2_i32_100 : i32
    %256 = tpu.assume_multiple %255, 2 : i32
    %257 = arith.index_cast %256 : i32 to index
    %c0_101 = arith.constant 0 : index
    %258 = vector.load %arg12[%257, %c0_101] : memref<16x32xf32, #tpu.memory_space<vmem>>, vector<2x32xf32>
    %259 = arith.index_cast %256 : i32 to index
    %c0_102 = arith.constant 0 : index
    %260 = vector.load %arg13[%259, %c0_102] : memref<16x32xf32, #tpu.memory_space<vmem>>, vector<2x32xf32>
    %261 = arith.index_cast %256 : i32 to index
    %c0_103 = arith.constant 0 : index
    %262 = vector.load %arg14[%261, %c0_103] : memref<16x32xf32, #tpu.memory_space<vmem>>, vector<2x32xf32>
    %cst_104 = arith.constant dense<0.000000e+00> : vector<2x32xf32>
    %263 = tpu.matmul %254, %19, %cst_104 {dimension_numbers = #tpu.dot_dimension_numbers<[1], [0], [0], [1], [0, 0, 1, 1], [], []>} : vector<2x32xf32>, vector<32x32xf32>, vector<2x32xf32> -> vector<2x32xf32>
    %cst_105 = arith.constant dense<0.000000e+00> : vector<2x32xf32>
    %264 = tpu.matmul %254, %20, %cst_105 {dimension_numbers = #tpu.dot_dimension_numbers<[1], [0], [0], [1], [0, 0, 1, 1], [], []>} : vector<2x32xf32>, vector<32x32xf32>, vector<2x32xf32> -> vector<2x32xf32>
    %cst_106 = arith.constant dense<0.000000e+00> : vector<2x32xf32>
    %265 = tpu.matmul %254, %21, %cst_106 {dimension_numbers = #tpu.dot_dimension_numbers<[1], [0], [0], [1], [0, 0, 1, 1], [], []>} : vector<2x32xf32>, vector<32x32xf32>, vector<2x32xf32> -> vector<2x32xf32>
    %266 = vector.broadcast %22 : vector<1x32xf32> to vector<2x32xf32>
    %267 = arith.addf %265, %266 : vector<2x32xf32>
    %268 = arith.addf %258, %263 : vector<2x32xf32>
    %269 = arith.negf %268 : vector<2x32xf32>
    %270 = math.exp %269 : vector<2x32xf32>
    %cst_107 = arith.constant 1.000000e+00 : f32
    %271 = vector.broadcast %cst_107 : f32 to vector<2x32xf32>
    %272 = arith.addf %271, %270 : vector<2x32xf32>
    %273 = arith.divf %271, %272 : vector<2x32xf32>
    %274 = arith.addf %260, %264 : vector<2x32xf32>
    %275 = arith.negf %274 : vector<2x32xf32>
    %276 = math.exp %275 : vector<2x32xf32>
    %cst_108 = arith.constant 1.000000e+00 : f32
    %277 = vector.broadcast %cst_108 : f32 to vector<2x32xf32>
    %278 = arith.addf %277, %276 : vector<2x32xf32>
    %279 = arith.divf %277, %278 : vector<2x32xf32>
    %280 = arith.mulf %273, %267 : vector<2x32xf32>
    %281 = arith.addf %262, %280 : vector<2x32xf32>
    %282 = math.tanh %281 : vector<2x32xf32>
    %cst_109 = arith.constant 1.000000e+00 : f32
    %283 = vector.broadcast %cst_109 : f32 to vector<2x32xf32>
    %284 = arith.subf %283, %279 : vector<2x32xf32>
    %285 = arith.mulf %284, %282 : vector<2x32xf32>
    %286 = arith.mulf %279, %254 : vector<2x32xf32>
    %287 = arith.addf %285, %286 : vector<2x32xf32>
    %c8_i32 = arith.constant 8 : i32
    %c0_110 = arith.constant 0 : index
    %c0_111 = arith.constant 0 : index
    %288 = vector.load %arg11[%c0_110, %c0_111] : memref<2x32xf32, #tpu.memory_space<vmem>>, vector<2x32xf32>
    tpu.vector_store %arg11[%c0_110, %c0_111], %287 {strides = array<i32>} : memref<2x32xf32, #tpu.memory_space<vmem>>, vector<2x32xf32>,
    return
  }
}

</mosaic_0001>

<bundles_post_ra>
// kernel: tpu_custom_call.1
= control target key start
LH: loop header
LB: loop body
LE: loop exit
PB: predicated region body
PF: predicated region fallthrough
CT: control target
= control target key end

     0   :  { %16 = vsyncpa [#allocation6], 0  ;;  %s3717_s0 = inlined_call_operand.hbm [shape: f32[16,32], index: 0, kind: input, shape index: {}]   ;;  %s3718_s1 = inlined_call_operand.hbm [shape: f32[32,32], index: 1, kind: input, shape index: {}]   ;;  %s3719_s2 = inlined_call_operand.hbm [shape: f32[32,32], index: 2, kind: input, shape index: {}]   ;;  %s3720_s3 = inlined_call_operand.hbm [shape: f32[32,32], index: 3, kind: input, shape index: {}]   ;;  %s3721_s4 = inlined_call_operand.hbm [shape: f32[32,32], index: 4, kind: input, shape index: {}]   ;;  %s3722_s5 = inlined_call_operand.hbm [shape: f32[32,32], index: 5, kind: input, shape index: {}]   ;;  %s3723_s6 = inlined_call_operand.hbm [shape: f32[32,32], index: 6, kind: input, shape index: {}]   ;;  %s3724_s7 = inlined_call_operand.vmem [shape: f32[1,32], index: 7, kind: input, shape index: {}]   ;;  %s3725_s8 = inlined_call_operand.vmem [shape: f32[1,32], index: 8, kind: input, shape index: {}]   ;;  %s3726_s9 = inlined_call_operand.vmem [shape: f32[1,32], index: 9, kind: input, shape index: {}]   ;;  %s3727_s10 = inlined_call_operand.vmem [shape: f32[1,32], index: 10, kind: input, shape index: {}]   ;;  %s3728_s11 = inlined_call_operand.hbm [shape: f32[2,32], index: 11, kind: output, shape index: {}]  }
   0x1   :  { %17 = vsyncpa [#allocation9], 0 }
   0x2   :  { %18 = vsyncpa [#allocation12], 0 }
   0x3   :  { %19 = vsyncpa [#allocation15], 0 }
   0x4   :  { %20 = vsyncpa [#allocation7], 0  ;;  %s3292_s17 = smov [#allocation8]   ;;  %s3293_s19 = smov [#allocation11]  }
   0x5   :  { %s38_s18 = sshll.u32 %s3292_s17, 4  ;;  %s62_s20 = sshll.u32 %s3293_s19, 4  ;;  %s39_s18 = int_to_ptr.vmem [resolvable:$true] %s38_s18  ;;  %s3365_s20 = int_to_ptr.vmem [resolvable:$true] %s62_s20 }
   0x6   :  { %s3106_s23 = scalar_lea.hbm %s3718_s1, 512 }
   0x7   :  { %p3107_p0 = scmp.ne.s32.totalorder %s3718_s1, %s3106_s23  ;;  %p3110_p1 = scmp.lt.u32.totalorder %s3106_s23, %s3718_s1 }
   0x9   :  { %p3112_p2 = pnand %p3110_p1, %p3107_p0 }
   0xb   :  { %3115 = shalt.err (!%p3112_p2)
}
   0xc   :  { %s3116_s28 = scalar_lea.vmem %s39_s18, 512  ;;  %p3121_p4 = scmp.lt.s32.totalorder %s39_s18, %s39_s18 }
   0xd   :  { %p3117_p3 = scmp.ne.s32.totalorder %s39_s18, %s3116_s28  ;;  %p3122_p5 = scmp.lt.s32.totalorder %s3116_s28, %s3116_s28 }
   0xf   :  { %p3123_p6 = por %p3122_p5, %p3121_p4 }
  0x11   :  { %p3124_p7 = pnand %p3123_p6, %p3117_p3 }
  0x13   :  { %3127 = shalt.err (!%p3124_p7)
}
  0x14   :  { %s3294_s29 = smov 128   ;;  %s3295_s30 = smov 8  }
  0x15   :  { %44 = dma.hbm_to_vmem [thread:$0]  %s3718_s1, 512, %s39_s18, [#allocation9], %s3294_s29, %s3294_s29, %s3295_s30  }
  0x16   :  { %s3128_s16 = scalar_lea.hbm %s3720_s3, 512 }
  0x17   :  { %p3129_p8 = scmp.ne.s32.totalorder %s3720_s3, %s3128_s16  ;;  %p3132_p9 = scmp.lt.u32.totalorder %s3128_s16, %s3720_s3 }
  0x19   :  { %p3134_p10 = pnand %p3132_p9, %p3129_p8 }
  0x1b   :  { %3137 = shalt.err (!%p3134_p10)
}
  0x1c   :  { %s3138_s23 = scalar_lea.vmem %s3365_s20, 512  ;;  %p3143_p12 = scmp.lt.s32.totalorder %s3365_s20, %s3365_s20 }
  0x1d   :  { %p3139_p11 = scmp.ne.s32.totalorder %s3365_s20, %s3138_s23  ;;  %p3144_p13 = scmp.lt.s32.totalorder %s3138_s23, %s3138_s23 }
  0x1f   :  { %p3145_p0 = por %p3144_p13, %p3143_p12 }
  0x21   :  { %p3146_p1 = pnand %p3145_p0, %p3139_p11 }
  0x23   :  { %3149 = shalt.err (!%p3146_p1)
}
  0x24   :  { %68 = dma.hbm_to_vmem [thread:$0]  %s3720_s3, 512, %s3365_s20, [#allocation12], %s3294_s29, %s3294_s29, %s3295_s30  }
  0x25   :  { %s3296_s24 = smov [#allocation14]   ;;  %s3297_s26 = smov [#allocation5]  }
  0x26   :  { %s86_s25 = sshll.u32 %s3296_s24, 4  ;;  %s26_s27 = sshll.u32 %s3297_s26, 4  ;;  %s87_s25 = int_to_ptr.vmem [resolvable:$true] %s86_s25  ;;  %s3402_s27 = int_to_ptr.vmem [resolvable:$true] %s26_s27 }
  0x27   :  { %s3150_s13 = scalar_lea.hbm %s3722_s5, 512 }
  0x28   :  { %p3151_p2 = scmp.ne.s32.totalorder %s3722_s5, %s3150_s13  ;;  %p3154_p3 = scmp.lt.u32.totalorder %s3150_s13, %s3722_s5 }
  0x2a   :  { %p3156_p4 = pnand %p3154_p3, %p3151_p2 }
  0x2c   :  { %3159 = shalt.err (!%p3156_p4)
}
  0x2d   :  { %s3160_s3 = scalar_lea.vmem %s87_s25, 512  ;;  %p3165_p6 = scmp.lt.s32.totalorder %s87_s25, %s87_s25 }
  0x2e   :  { %p3161_p5 = scmp.ne.s32.totalorder %s87_s25, %s3160_s3  ;;  %p3166_p7 = scmp.lt.s32.totalorder %s3160_s3, %s3160_s3 }
  0x30   :  { %p3167_p8 = por %p3166_p7, %p3165_p6 }
  0x32   :  { %p3168_p9 = pnand %p3167_p8, %p3161_p5 }
  0x34   :  { %3171 = shalt.err (!%p3168_p9)
}
  0x35   :  { %92 = dma.hbm_to_vmem [thread:$0]  %s3722_s5, 512, %s87_s25, [#allocation15], %s3294_s29, %s3294_s29, %s3295_s30  }
  0x36   :  { %s3172_s23 = scalar_lea.hbm %s3717_s0, 256 }
  0x37   :  { %p3173_p10 = scmp.ne.s32.totalorder %s3717_s0, %s3172_s23  ;;  %p3176_p11 = scmp.lt.u32.totalorder %s3172_s23, %s3717_s0 }
  0x39   :  { %p3178_p12 = pnand %p3176_p11, %p3173_p10 }
  0x3b   :  { %3181 = shalt.err (!%p3178_p12)
}
  0x3c   :  { %s3182_s28 = scalar_lea.vmem %s3402_s27, 256  ;;  %p3187_p0 = scmp.lt.s32.totalorder %s3402_s27, %s3402_s27 }
  0x3d   :  { %p3183_p13 = scmp.ne.s32.totalorder %s3402_s27, %s3182_s28  ;;  %p3188_p1 = scmp.lt.s32.totalorder %s3182_s28, %s3182_s28 }
  0x3f   :  { %p3189_p2 = por %p3188_p1, %p3187_p0 }
  0x41   :  { %p3190_p3 = pnand %p3189_p2, %p3183_p13 }
  0x43   :  { %3193 = shalt.err (!%p3190_p3)
}
  0x44   :  { %32 = dma.hbm_to_vmem [thread:$0]  %s3717_s0, 256, %s3402_s27, [#allocation6], %s3294_s29, %s3294_s29, %s3295_s30  }
  0x45   :  { %s3298_s12 = smov [#allocation10]   ;;  %s3299_s14 = smov [#allocation13]  }
  0x46   :  { %s50_s13 = sshll.u32 %s3298_s12, 4  ;;  %s74_s15 = sshll.u32 %s3299_s14, 4  ;;  %s51_s13 = int_to_ptr.vmem [resolvable:$true] %s50_s13  ;;  %s3439_s15 = int_to_ptr.vmem [resolvable:$true] %s74_s15 }
  0x47   :  { %s3194_s3 = scalar_lea.hbm %s3719_s2, 512 }
  0x48   :  { %p3195_p4 = scmp.ne.s32.totalorder %s3719_s2, %s3194_s3  ;;  %p3198_p5 = scmp.lt.u32.totalorder %s3194_s3, %s3719_s2 }
  0x4a   :  { %p3200_p6 = pnand %p3198_p5, %p3195_p4 }
  0x4c   :  { %3203 = shalt.err (!%p3200_p6)
}
  0x4d   :  { %s3204_s0 = scalar_lea.vmem %s51_s13, 512  ;;  %p3209_p8 = scmp.lt.s32.totalorder %s51_s13, %s51_s13 }
  0x4e   :  { %p3205_p7 = scmp.ne.s32.totalorder %s51_s13, %s3204_s0  ;;  %p3210_p9 = scmp.lt.s32.totalorder %s3204_s0, %s3204_s0 }
  0x50   :  { %p3211_p10 = por %p3210_p9, %p3209_p8 }
  0x52   :  { %p3212_p11 = pnand %p3211_p10, %p3205_p7 }
  0x54   :  { %3215 = shalt.err (!%p3212_p11)
}
  0x55   :  { %56 = dma.hbm_to_vmem [thread:$0]  %s3719_s2, 512, %s51_s13, [#allocation9], %s3294_s29, %s3294_s29, %s3295_s30  }
  0x56   :  { %s3216_s24 = scalar_lea.hbm %s3721_s4, 512 }
  0x57   :  { %p3217_p12 = scmp.ne.s32.totalorder %s3721_s4, %s3216_s24  ;;  %p3220_p13 = scmp.lt.u32.totalorder %s3216_s24, %s3721_s4 }
  0x59   :  { %p3222_p0 = pnand %p3220_p13, %p3217_p12 }
  0x5b   :  { %3225 = shalt.err (!%p3222_p0)
}
  0x5c   :  { %s3226_s12 = scalar_lea.vmem %s3439_s15, 512  ;;  %p3231_p2 = scmp.lt.s32.totalorder %s3439_s15, %s3439_s15 }
  0x5d   :  { %p3227_p1 = scmp.ne.s32.totalorder %s3439_s15, %s3226_s12  ;;  %p3232_p3 = scmp.lt.s32.totalorder %s3226_s12, %s3226_s12 }
  0x5f   :  { %p3233_p4 = por %p3232_p3, %p3231_p2 }
  0x61   :  { %p3234_p5 = pnand %p3233_p4, %p3227_p1 }
  0x63   :  { %3237 = shalt.err (!%p3234_p5)
}
  0x64   :  { %80 = dma.hbm_to_vmem [thread:$0]  %s3721_s4, 512, %s3439_s15, [#allocation12], %s3294_s29, %s3294_s29, %s3295_s30  }
  0x65   :  { %s3300_s14 = smov [#allocation16]   ;;  %s3238_s20 = scalar_lea.hbm %s3723_s6, 512 }
  0x66   :  { %s98_s16 = sshll.u32 %s3300_s14, 4  ;;  %p3239_p6 = scmp.ne.s32.totalorder %s3723_s6, %s3238_s20  ;;  %s99_s16 = int_to_ptr.vmem [resolvable:$true] %s98_s16 }
  0x67   :  { %p3242_p7 = scmp.lt.u32.totalorder %s3238_s20, %s3723_s6 }
  0x69   :  { %p3244_p8 = pnand %p3242_p7, %p3239_p6 }
  0x6b   :  { %3247 = shalt.err (!%p3244_p8)
}
  0x6c   :  { %s3248_s27 = scalar_lea.vmem %s99_s16, 512  ;;  %p3253_p10 = scmp.lt.s32.totalorder %s99_s16, %s99_s16 }
  0x6d   :  { %p3249_p9 = scmp.ne.s32.totalorder %s99_s16, %s3248_s27  ;;  %p3254_p11 = scmp.lt.s32.totalorder %s3248_s27, %s3248_s27 }
  0x6f   :  { %p3255_p12 = por %p3254_p11, %p3253_p10 }
  0x71   :  { %p3256_p13 = pnand %p3255_p12, %p3249_p9 }
  0x73   :  { %3259 = shalt.err (!%p3256_p13)
}
  0x74   :  { %104 = dma.hbm_to_vmem [thread:$0]  %s3723_s6, 512, %s99_s16, [#allocation15], %s3294_s29, %s3294_s29, %s3295_s30  }
  0x75   :  { %3282 = dma.done.wait [#allocation6], 256  }
  0x76   :  { %3283 = vsyncadd [#allocation6], 4294967040 }
  0x77   :  { %3284 = dma.done.wait [#allocation9], 1024  }
  0x78   :  { %3285 = vsyncadd [#allocation9], 4294966272 }
  0x79   :  { %3286 = dma.done.wait [#allocation12], 1024  }
  0x7a   :  { %3287 = vsyncadd [#allocation12], 4294966272 }
  0x7b   :  { %3288 = dma.done.wait [#allocation15], 1024  }
  0x7c   :  { %3289 = vsyncadd [#allocation15], 4294966272  ;;  %v136_v0 = vld [vmem:[#allocation8] sm:$0xff]  ;;  %v137_v1 = vld [vmem:[#allocation8 + $0x8] sm:$0xff]  ;;  %vm147_vm0 = vcmask 261120   ;;  %v3301_v23 = vmov 0.0|0.0  }
  0x7d   :  { %v231_v2 = vld [vmem:[#allocation10] sm:$0xff]  ;;  %v2845_v3 = vpack.c.bf16 %v137_v1, %v136_v0  ;;  %v232_v4 = vld [vmem:[#allocation10 + $0x8] sm:$0xff]  ;;  %v138_v5 = vld [vmem:[#allocation8 + $0x10] sm:$0xff]  ;;  %vm3302_vm1 = vmmov 0   ;;  %v3303_v29 = vmov 0.0   ;;  %vm2343_vm2 = vcmask 254976  }
  0x7e   :  { %v139_v6 = vld [vmem:[#allocation8 + $0x18] sm:$0xff]  ;;  %v2853_v7 = vpack.c.bf16 %v232_v4, %v231_v2  ;;  %v233_v9 = vld [vmem:[#allocation10 + $0x10] sm:$0xff]  ;;  %v319_v13 = vld [vmem:[#allocation11] sm:$0xff] }
  0x7f   :  { %v2849_v8 = vpack.c.bf16 %v139_v6, %v138_v5  ;;  %v234_v10 = vld [vmem:[#allocation10 + $0x18] sm:$0xff]  ;;  %v134_v11 = vld [vmem:[#allocation5] sm:$0xff]  ;;  %2846 = vmatprep.subr.bf16.mxu0 %v2845_v3  ;;  %v320_v14 = vld [vmem:[#allocation11 + $0x8] sm:$0xff] }
  0x80   :  { %v2857_v12 = vpack.c.bf16 %v234_v10, %v233_v9  ;;  %2556 = vmatprep.mubr.msk.f32.mxu0 %vm147_vm0, %v134_v11  ;;  %2848 = vmatpush3.bf16.msra.mxu0 %v2845_v3  ;;  %v2861_v15 = vpack.c.bf16 %v320_v14, %v319_v13  ;;  %v407_v16 = vld [vmem:[#allocation13] sm:$0xff]  ;;  %v408_v17 = vld [vmem:[#allocation13 + $0x8] sm:$0xff]  ;;  %v321_v18 = vld [vmem:[#allocation11 + $0x10] sm:$0xff] }
  0x81   :  { %2854 = vmatprep.subr.bf16.mxu1 %v2853_v7  ;;  %2850 = vmatprep.subr.bf16.mxu0 %v2849_v8  ;;  %v322_v19 = vld [vmem:[#allocation11 + $0x18] sm:$0xff]  ;;  %v3493_v21 = vpack.c.bf16 %v408_v17, %v407_v16  ;;  %v409_v24 = vld [vmem:[#allocation13 + $0x10] sm:$0xff]  ;;  %v411_v27 = vld [vmem:[#allocation14] sm:$0xff] }
  0x82   :  { %2856 = vmatpush3.bf16.msra.mxu1 %v2853_v7  ;;  %2567 = vmatprep.mubr.msk.f32.mxu1 %vm147_vm0, %v134_v11  ;;  %v135_v20 = vld [vmem:[#allocation5 + $0x8] sm:$0xff]  ;;  %v2865_v22 = vpack.c.bf16 %v322_v19, %v321_v18  ;;  %v412_v28 = vld [vmem:[#allocation14 + $0x8] sm:$0xff]  ;;  %v415_v30 = vld [vmem:[#allocation16] sm:$0xff] }
  0x83   :  { %2858 = vmatprep.subr.bf16.mxu1 %v2857_v12  ;;  %v410_v25 = vld [vmem:[#allocation13 + $0x18] sm:$0xff]  ;;  %v416_v31 = vld [vmem:[#allocation16 + $0x8] sm:$0xff]  ;;  %v3505_v32 = vpack.c.bf16 %v412_v28, %v411_v27  ;;  %v413_v33 = vld [vmem:[#allocation14 + $0x10] sm:$0xff] }
  0x84   :  { %2852 = vmatpush3.bf16.msra.mxu0 %v2849_v8  ;;  %v3499_v26 = vpack.c.bf16 %v410_v25, %v409_v24  ;;  %v414_v34 = vld [vmem:[#allocation14 + $0x18] sm:$0xff]  ;;  %v3510_v35 = vpack.c.bf16 %v416_v31, %v415_v30  ;;  %v417_v36 = vld [vmem:[#allocation16 + $0x10] sm:$0xff]  ;;  %v2363_v40 = vld [vmem:[%s3724_s7] ss:$0 sm:$0xff] }
  0x85   :  { %2862 = vmatprep.subr.bf16.mxu0 %v2861_v15  ;;  %v418_v37 = vld [vmem:[#allocation16 + $0x18] sm:$0xff]  ;;  %v3515_v38 = vpack.c.bf16 %v414_v34, %v413_v33  ;;  %v2366_v41 = vld [vmem:[%s3725_s8] ss:$0 sm:$0xff] }
  0x86   :  { %2860 = vmatpush3.bf16.msra.mxu1 %v2857_v12  ;;  %v3521_v39 = vpack.c.bf16 %v418_v37, %v417_v36  ;;  %v2369_v50 = vld [vmem:[%s3726_s9] ss:$0 sm:$0xff] }
  0x87   :  { %2869 = vmatprep.subr.bf16.mxu1 %v3301_v23  ;;  %2557 = vmatmul.mubr.msk.f32.vlgmr.msra.gmra.mrb[0].mxu0 %vm147_vm0, %v135_v20  ;;  %v3562_v6 = vld [vmem:[%s3727_s10] ss:$0 sm:$0xff]  ;;  %s3304_s10 = smov [#allocation17]  }
  0x88   :  { %2864 = vmatpush3.bf16.msra.mxu0 %v2861_v15  ;;  %2578 = vmatprep.mubr.msk.f32.mxu0 %vm147_vm0, %v134_v11  ;;  %s2351_s18 = sshll.u32 %s3304_s10, 4  ;;  %s2352_s18 = int_to_ptr.vmem [resolvable:$true] %s2351_s18 }
  0x89   :  { %2568 = vmatmul.mubr.msk.f32.vlgmr.msra.gmra.mrb[0].mxu1 %vm147_vm0, %v135_v20  ;;  %2866 = vmatprep.subr.bf16.mxu0 %v2865_v22  ;;  %s3260_s24 = scalar_lea.vmem %s2352_s18, 32  ;;  %p3265_p1 = scmp.lt.s32.totalorder %s2352_s18, %s2352_s18 }
  0x8a   :  { %2871 = vmatpush3.bf16.msra.mxu1 %v3493_v21  ;;  %2589 = vmatprep.mubr.msk.f32.mxu1 %vm3302_vm1, %v3303_v29  ;;  %p3261_p0 = scmp.ne.s32.totalorder %s2352_s18, %s3260_s24  ;;  %p3266_p2 = scmp.lt.s32.totalorder %s3260_s24, %s3260_s24 }
  0x8b   :  { %2872 = vmatprep.subr.bf16.mxu1 %v3301_v23 }
  0x8c   :  { %2868 = vmatpush3.bf16.msra.mxu0 %v2865_v22  ;;  %p3267_p3 = por %p3266_p2, %p3265_p1 }
  0x8d   :  { %2875 = vmatprep.subr.bf16.mxu0 %v3301_v23 }
  0x8e   :  { %2874 = vmatpush3.bf16.msra.mxu1 %v3499_v26  ;;  %p3268_p4 = pnand %p3267_p3, %p3261_p0 }
  0x8f   :  { %2881 = vmatprep.subr.bf16.mxu1 %v3301_v23  ;;  %2579 = vmatmul.mubr.msk.f32.vlgmr.msra.gmra.mrb[2].mxu0 %vm147_vm0, %v135_v20 }
  0x90   :  { %2877 = vmatpush3.bf16.msra.mxu0 %v3505_v32  ;;  %2600 = vmatprep.mubr.msk.f32.mxu0 %vm3302_vm1, %v3303_v29 }
  0x91   :  { %2590 = vmatmul.mubr.f32.vlgmr.msra.gmra.mrb[2].mxu1 %v3303_v29  ;;  %2878 = vmatprep.subr.bf16.mxu0 %v3301_v23 }
  0x92   :  { %2883 = vmatpush3.bf16.msra.mxu1 %v3510_v35  ;;  %2611 = vmatprep.mubr.msk.f32.mxu1 %vm3302_vm1, %v3303_v29 }
  0x93   :  { %2884 = vmatprep.subr.bf16.mxu1 %v3301_v23 }
  0x94   :  { %2880 = vmatpush3.bf16.msra.mxu0 %v3515_v38 }
  0x95   :  { %2887 = vmatprep.subr.bf16.mxu0 %v3301_v23 }
  0x96   :  { %2886 = vmatpush3.bf16.msra.mxu1 %v3521_v39 }
  0x97   :  { %2601 = vmatmul.mubr.f32.vlgmr.msra.gmra.mrb[4].mxu0 %v3303_v29  ;;  %2893 = vmatprep.subr.bf16.mxu1 %v3301_v23 }
  0x98   :  { %2889 = vmatpush3.bf16.msra.mxu0 %v3493_v21  ;;  %2622 = vmatprep.mubr.msk.f32.mxu0 %vm3302_vm1, %v3303_v29 }
  0x99   :  { %2612 = vmatmul.mubr.f32.vlgmr.msra.gmra.mrb[4].mxu1 %v3303_v29  ;;  %2890 = vmatprep.subr.bf16.mxu0 %v3301_v23 }
  0x9a   :  { %2895 = vmatpush3.bf16.msra.mxu1 %v3505_v32  ;;  %2633 = vmatprep.mubr.msk.f32.mxu1 %vm3302_vm1, %v3303_v29 }
  0x9b   :  { %2896 = vmatprep.subr.bf16.mxu1 %v3301_v23 }
  0x9c   :  { %2892 = vmatpush3.bf16.msra.mxu0 %v3499_v26 }
  0x9d   :  { %2899 = vmatprep.subr.bf16.mxu0 %v3301_v23 }
  0x9e   :  { %2898 = vmatpush3.bf16.msra.mxu1 %v3515_v38 }
  0x9f   :  { %2905 = vmatprep.subr.bf16.mxu1 %v3301_v23 }
 0x15a   :  { %v2558_v42 = vpop.f32.mrb[0].mxu0 }
 0x15b   :  { %v226_v43 = vadd.f32 %v2558_v42, %v2363_v40  ;;  %v220_v44 = vpop.f32.mrb[1].mxu0 }
 0x15c   :  { %v2569_v45 = vpop.f32.mrb[0].mxu1  ;;  %v221_v46 = vadd.f32 %v2363_v40, %v220_v44 }
 0x15d   :  { %v314_v47 = vadd.f32 %v2569_v45, %v2366_v41  ;;  %v308_v48 = vpop.f32.mrb[1].mxu1  ;;  %230 = vst.msk [vmem:[#allocation2 + $0x8] sm:$0xff] %vm147_vm0, %v226_v43 }
 0x15e   :  { %v309_v49 = vadd.f32 %v2366_v41, %v308_v48  ;;  %229 = vst.msk [vmem:[#allocation2] sm:$0xff] %vm147_vm0, %v221_v46 }
 0x15f   :  { %318 = vst.msk [vmem:[#allocation3 + $0x8] sm:$0xff] %vm147_vm0, %v314_v47 }
 0x160   :  { %317 = vst.msk [vmem:[#allocation3] sm:$0xff] %vm147_vm0, %v309_v49 }
 0x162   :  { %v2580_v51 = vpop.f32.mrb[2].mxu0 }
 0x163   :  { %v402_v53 = vadd.f32 %v2580_v51, %v2369_v50  ;;  %v396_v54 = vpop.f32.mrb[3].mxu0 }
 0x164   :  { %v492_v52 = vpop.f32.mrb[2].mxu1  ;;  %v397_v56 = vadd.f32 %v2369_v50, %v396_v54 }
 0x165   :  { %v2591_v55 = vpop.f32.mrb[3].mxu1  ;;  %v420_v57 = vld [vmem:[#allocation2] sm:$0x3]  ;;  %406 = vst.msk [vmem:[#allocation4 + $0x8] sm:$0xff] %vm147_vm0, %v402_v53  ;;  %v664_v19 = vld [vmem:[#allocation2 + $0x2] sm:$0x3] }
 0x166   :  { %v642_v58 = vadd.f32 %v492_v52, %v420_v57  ;;  %405 = vst.msk [vmem:[#allocation4] sm:$0xff] %vm147_vm0, %v397_v56  ;;  %v904_v54 = vld [vmem:[#allocation2 + $0x4] sm:$0x3] }
 0x167   :  { %v421_v60 = vld [vmem:[#allocation3] sm:$0x3]  ;;  %v666_v30 = vld [vmem:[#allocation3 + $0x2] sm:$0x3] }
 0x168   :  { %v2373_v59 = vmul.f32 -1.442695, %v642_v58 }
 0x16a   :  { %3026 = vpow2.f32 %v2373_v59  ;;  %v562_v61 = vpop.f32.mrb[4].mxu0 }
 0x16b   :  { %v649_v62 = vadd.f32 %v562_v61, %v421_v60  ;;  %v2602_v63 = vpop.f32.mrb[5].mxu0  ;;  %v906_v61 = vld [vmem:[#allocation3 + $0x4] sm:$0x3] }
 0x16c   :  { %v638_v0 = vpop.f32.mrb[4].mxu1 }
 0x16d   :  { %v2374_v1 = vmul.f32 -1.442695, %v649_v62  ;;  %v2613_v2 = vpop.f32.mrb[5].mxu1  ;;  %v639_v8 = vadd.f32 %v3562_v6, %v638_v0  ;;  %v422_v11 = vld [vmem:[#allocation4] sm:$0x3] }
 0x16e   :  { %v668_v46 = vld [vmem:[#allocation4 + $0x2] sm:$0x3] }
 0x16f   :  { %3028 = vpow2.f32 %v2374_v1 }
 0x174   :  { %v3027_v3 = vpop.eup %3026 }
 0x175   :  { %v646_v4 = vadd.f32 1.0, %v3027_v3 }
 0x177   :  { %3030 = vrcp.f32 %v646_v4 }
 0x179   :  { %v3029_v5 = vpop.eup %3028 }
 0x17a   :  { %v653_v7 = vadd.f32 1.0, %v3029_v5 }
 0x17c   :  { %3032 = vrcp.f32 %v653_v7 }
 0x181   :  { %v3031_v9 = vpop.eup %3030 }
 0x182   :  { %v656_v10 = vmul.f32 %v3031_v9, %v639_v8 }
 0x184   :  { %v657_v12 = vadd.f32 %v656_v10, %v422_v11  ;;  %v908_v10 = vld [vmem:[#allocation4 + $0x4] sm:$0x3] }
 0x186   :  { %3034 = vtanh.f32 %v657_v12  ;;  %v3033_v13 = vpop.eup %3032 }
 0x187   :  { %v659_v14 = vsub.f32 1.0, %v3033_v13  ;;  %v661_v17 = vmul.f32 0.0, %v3033_v13 }
 0x190   :  { %v3035_v15 = vpop.eup %3034 }
 0x191   :  { %v660_v16 = vmul.f32 %v3035_v15, %v659_v14 }
 0x193   :  { %v662_v18 = vadd.f32 %v661_v17, %v660_v16 }
 0x195   :  { %2623 = vmatmul.mubr.msk.f32.vlgmr.msra.gmra.mrb[6].mxu0 %vm147_vm0, %v662_v18  ;;  %2634 = vmatmul.mubr.msk.f32.vlgmr.msra.gmra.mrb[6].mxu1 %vm147_vm0, %v662_v18 }
 0x196   :  { %2901 = vmatpush3.bf16.msra.mxu0 %v3510_v35  ;;  %2644 = vmatprep.mubr.msk.f32.mxu0 %vm3302_vm1, %v3303_v29 }
 0x197   :  { %2902 = vmatprep.subr.bf16.mxu0 %v3301_v23  ;;  %2907 = vmatpush3.bf16.msra.mxu1 %v3493_v21 }
 0x198   :  { %2908 = vmatprep.subr.bf16.mxu1 %v3301_v23  ;;  %2655 = vmatprep.mubr.msk.f32.mxu1 %vm3302_vm1, %v3303_v29 }
 0x19a   :  { %2904 = vmatpush3.bf16.msra.mxu0 %v3521_v39 }
 0x19b   :  { %2911 = vmatprep.subr.bf16.mxu0 %v3301_v23  ;;  %2910 = vmatpush3.bf16.msra.mxu1 %v3499_v26 }
 0x19c   :  { %2917 = vmatprep.subr.bf16.mxu1 %v3301_v23 }
 0x19d   :  { %2645 = vmatmul.mubr.msk.f32.vlgmr.msra.gmra.mrb[8].mxu0 %vm147_vm0, %v662_v18 }
 0x19e   :  { %2913 = vmatpush3.bf16.msra.mxu0 %v3505_v32  ;;  %2666 = vmatprep.mubr.msk.f32.mxu0 %vm3302_vm1, %v3303_v29 }
 0x19f   :  { %2914 = vmatprep.subr.bf16.mxu0 %v3301_v23 }
 0x1a2   :  { %2916 = vmatpush3.bf16.msra.mxu0 %v3515_v38 }
 0x1a3   :  { %2923 = vmatprep.subr.bf16.mxu0 %v3301_v23 }
 0x268   :  { %v738_v20 = vpop.f32.mrb[6].mxu0  ;;  %v808_v22 = vpop.f32.mrb[6].mxu1 }
 0x269   :  { %v882_v24 = vadd.f32 %v738_v20, %v664_v19  ;;  %v2624_v25 = vpop.f32.mrb[7].mxu0  ;;  %v2635_v27 = vpop.f32.mrb[7].mxu1  ;;  %v889_v31 = vadd.f32 %v808_v22, %v666_v30 }
 0x26b   :  { %v2378_v28 = vmul.f32 -1.442695, %v882_v24  ;;  %v2379_v33 = vmul.f32 -1.442695, %v889_v31 }
 0x26d   :  { %3036 = vpow2.f32 %v2378_v28  ;;  %v1146_v28 = vld [vmem:[#allocation3 + $0x6] sm:$0x3] }
 0x26e   :  { %3038 = vpow2.f32 %v2379_v33 }
 0x270   :  { %v878_v34 = vpop.f32.mrb[8].mxu0 }
 0x271   :  { %v2646_v36 = vpop.f32.mrb[9].mxu0  ;;  %v879_v43 = vadd.f32 %v3562_v6, %v878_v34 }
 0x277   :  { %v3037_v37 = vpop.eup %3036 }
 0x278   :  { %v886_v40 = vadd.f32 1.0, %v3037_v37  ;;  %v3039_v41 = vpop.eup %3038 }
 0x279   :  { %v893_v42 = vadd.f32 1.0, %v3039_v41 }
 0x27a   :  { %3040 = vrcp.f32 %v886_v40 }
 0x27b   :  { %3042 = vrcp.f32 %v893_v42 }
 0x284   :  { %v3041_v44 = vpop.eup %3040 }
 0x285   :  { %v896_v45 = vmul.f32 %v3041_v44, %v879_v43  ;;  %v3043_v48 = vpop.eup %3042 }
 0x286   :  { %v899_v49 = vsub.f32 1.0, %v3043_v48  ;;  %v901_v52 = vmul.f32 %v3043_v48, %v662_v18  ;;  %v1144_v18 = vld [vmem:[#allocation2 + $0x6] sm:$0x3] }
 0x287   :  { %v897_v47 = vadd.f32 %v896_v45, %v668_v46  ;;  %v1148_v45 = vld [vmem:[#allocation4 + $0x6] sm:$0x3] }
 0x289   :  { %3044 = vtanh.f32 %v897_v47 }
 0x293   :  { %v3045_v50 = vpop.eup %3044 }
 0x294   :  { %v900_v51 = vmul.f32 %v3045_v50, %v899_v49 }
 0x296   :  { %v902_v53 = vadd.f32 %v901_v52, %v900_v51 }
 0x298   :  { %2656 = vmatmul.mubr.msk.f32.vlgmr.msra.gmra.mrb[8].mxu1 %vm147_vm0, %v902_v53  ;;  %2667 = vmatmul.mubr.msk.f32.vlgmr.msra.gmra.mrb[10].mxu0 %vm147_vm0, %v902_v53 }
 0x299   :  { %2919 = vmatpush3.bf16.msra.mxu1 %v3510_v35  ;;  %2677 = vmatprep.mubr.msk.f32.mxu1 %vm3302_vm1, %v3303_v29 }
 0x29a   :  { %2920 = vmatprep.subr.bf16.mxu1 %v3301_v23  ;;  %2925 = vmatpush3.bf16.msra.mxu0 %v3493_v21 }
 0x29b   :  { %2926 = vmatprep.subr.bf16.mxu0 %v3301_v23  ;;  %2688 = vmatprep.mubr.msk.f32.mxu0 %vm3302_vm1, %v3303_v29 }
 0x29d   :  { %2922 = vmatpush3.bf16.msra.mxu1 %v3521_v39 }
 0x29e   :  { %2929 = vmatprep.subr.bf16.mxu1 %v3301_v23  ;;  %2928 = vmatpush3.bf16.msra.mxu0 %v3499_v26 }
 0x29f   :  { %2935 = vmatprep.subr.bf16.mxu0 %v3301_v23 }
 0x2a0   :  { %2678 = vmatmul.mubr.msk.f32.vlgmr.msra.gmra.mrb[10].mxu1 %vm147_vm0, %v902_v53 }
 0x2a1   :  { %2931 = vmatpush3.bf16.msra.mxu1 %v3505_v32  ;;  %2699 = vmatprep.mubr.msk.f32.mxu1 %vm3302_vm1, %v3303_v29 }
 0x2a2   :  { %2932 = vmatprep.subr.bf16.mxu1 %v3301_v23 }
 0x2a5   :  { %2934 = vmatpush3.bf16.msra.mxu1 %v3515_v38 }
 0x2a6   :  { %2941 = vmatprep.subr.bf16.mxu1 %v3301_v23 }
 0x36b   :  { %v978_v55 = vpop.f32.mrb[8].mxu1  ;;  %v1048_v56 = vpop.f32.mrb[10].mxu0 }
 0x36c   :  { %v1122_v57 = vadd.f32 %v978_v55, %v904_v54  ;;  %v2657_v58 = vpop.f32.mrb[9].mxu1  ;;  %v2668_v59 = vpop.f32.mrb[11].mxu0  ;;  %v1129_v62 = vadd.f32 %v1048_v56, %v906_v61 }
 0x36e   :  { %v2383_v60 = vmul.f32 -1.442695, %v1122_v57  ;;  %v2384_v63 = vmul.f32 -1.442695, %v1129_v62 }
 0x370   :  { %3046 = vpow2.f32 %v2383_v60  ;;  %v1386_v60 = vld [vmem:[#allocation3 + $0x8] sm:$0x3] }
 0x371   :  { %3048 = vpow2.f32 %v2384_v63 }
 0x373   :  { %v1118_v0 = vpop.f32.mrb[10].mxu1 }
 0x374   :  { %v2679_v1 = vpop.f32.mrb[11].mxu1  ;;  %v1119_v7 = vadd.f32 %v3562_v6, %v1118_v0 }
 0x37a   :  { %v3047_v2 = vpop.eup %3046 }
 0x37b   :  { %v1126_v3 = vadd.f32 1.0, %v3047_v2  ;;  %v3049_v4 = vpop.eup %3048 }
 0x37c   :  { %v1133_v5 = vadd.f32 1.0, %v3049_v4 }
 0x37d   :  { %3050 = vrcp.f32 %v1126_v3 }
 0x37e   :  { %3052 = vrcp.f32 %v1133_v5 }
 0x387   :  { %v3051_v8 = vpop.eup %3050 }
 0x388   :  { %v1136_v9 = vmul.f32 %v3051_v8, %v1119_v7  ;;  %v3053_v12 = vpop.eup %3052 }
 0x389   :  { %v1139_v13 = vsub.f32 1.0, %v3053_v12  ;;  %v1141_v16 = vmul.f32 %v3053_v12, %v902_v53  ;;  %v1384_v53 = vld [vmem:[#allocation2 + $0x8] sm:$0x3] }
 0x38a   :  { %v1137_v11 = vadd.f32 %v1136_v9, %v908_v10  ;;  %v1388_v9 = vld [vmem:[#allocation4 + $0x8] sm:$0x3] }
 0x38c   :  { %3054 = vtanh.f32 %v1137_v11 }
 0x396   :  { %v3055_v14 = vpop.eup %3054 }
 0x397   :  { %v1140_v15 = vmul.f32 %v3055_v14, %v1139_v13 }
 0x399   :  { %v1142_v17 = vadd.f32 %v1141_v16, %v1140_v15 }
 0x39b   :  { %2689 = vmatmul.mubr.msk.f32.vlgmr.msra.gmra.mrb[12].mxu0 %vm147_vm0, %v1142_v17  ;;  %2700 = vmatmul.mubr.msk.f32.vlgmr.msra.gmra.mrb[12].mxu1 %vm147_vm0, %v1142_v17 }
 0x39c   :  { %2937 = vmatpush3.bf16.msra.mxu0 %v3510_v35  ;;  %2710 = vmatprep.mubr.msk.f32.mxu0 %vm3302_vm1, %v3303_v29 }
 0x39d   :  { %2938 = vmatprep.subr.bf16.mxu0 %v3301_v23  ;;  %2943 = vmatpush3.bf16.msra.mxu1 %v3493_v21 }
 0x39e   :  { %2944 = vmatprep.subr.bf16.mxu1 %v3301_v23  ;;  %2721 = vmatprep.mubr.msk.f32.mxu1 %vm3302_vm1, %v3303_v29 }
 0x3a0   :  { %2940 = vmatpush3.bf16.msra.mxu0 %v3521_v39 }
 0x3a1   :  { %2947 = vmatprep.subr.bf16.mxu0 %v3301_v23  ;;  %2946 = vmatpush3.bf16.msra.mxu1 %v3499_v26 }
 0x3a2   :  { %2953 = vmatprep.subr.bf16.mxu1 %v3301_v23 }
 0x3a3   :  { %2711 = vmatmul.mubr.msk.f32.vlgmr.msra.gmra.mrb[14].mxu0 %vm147_vm0, %v1142_v17 }
 0x3a4   :  { %2949 = vmatpush3.bf16.msra.mxu0 %v3505_v32  ;;  %2732 = vmatprep.mubr.msk.f32.mxu0 %vm3302_vm1, %v3303_v29 }
 0x3a5   :  { %2950 = vmatprep.subr.bf16.mxu0 %v3301_v23 }
 0x3a8   :  { %2952 = vmatpush3.bf16.msra.mxu0 %v3515_v38 }
 0x3a9   :  { %2959 = vmatprep.subr.bf16.mxu0 %v3301_v23 }
 0x46e   :  { %v1218_v19 = vpop.f32.mrb[12].mxu0  ;;  %v1288_v20 = vpop.f32.mrb[12].mxu1 }
 0x46f   :  { %v1362_v22 = vadd.f32 %v1218_v19, %v1144_v18  ;;  %v2690_v24 = vpop.f32.mrb[13].mxu0  ;;  %v2701_v25 = vpop.f32.mrb[13].mxu1  ;;  %v1369_v30 = vadd.f32 %v1288_v20, %v1146_v28 }
 0x471   :  { %v2388_v27 = vmul.f32 -1.442695, %v1362_v22  ;;  %v2389_v31 = vmul.f32 -1.442695, %v1369_v30 }
 0x473   :  { %3056 = vpow2.f32 %v2388_v27  ;;  %v1626_v27 = vld [vmem:[#allocation3 + $0xa] sm:$0x3] }
 0x474   :  { %3058 = vpow2.f32 %v2389_v31 }
 0x476   :  { %v1358_v33 = vpop.f32.mrb[14].mxu0 }
 0x477   :  { %v2712_v34 = vpop.f32.mrb[15].mxu0  ;;  %v1359_v42 = vadd.f32 %v3562_v6, %v1358_v33 }
 0x47d   :  { %v3057_v36 = vpop.eup %3056 }
 0x47e   :  { %v1366_v37 = vadd.f32 1.0, %v3057_v36  ;;  %v3059_v40 = vpop.eup %3058 }
 0x47f   :  { %v1373_v41 = vadd.f32 1.0, %v3059_v40 }
 0x480   :  { %3060 = vrcp.f32 %v1366_v37 }
 0x481   :  { %3062 = vrcp.f32 %v1373_v41 }
 0x48a   :  { %v3061_v43 = vpop.eup %3060 }
 0x48b   :  { %v1376_v44 = vmul.f32 %v3061_v43, %v1359_v42  ;;  %v3063_v47 = vpop.eup %3062 }
 0x48c   :  { %v1379_v48 = vsub.f32 1.0, %v3063_v47  ;;  %v1381_v51 = vmul.f32 %v3063_v47, %v1142_v17  ;;  %v1624_v17 = vld [vmem:[#allocation2 + $0xa] sm:$0x3] }
 0x48d   :  { %v1377_v46 = vadd.f32 %v1376_v44, %v1148_v45  ;;  %v1628_v44 = vld [vmem:[#allocation4 + $0xa] sm:$0x3] }
 0x48f   :  { %3064 = vtanh.f32 %v1377_v46 }
 0x499   :  { %v3065_v49 = vpop.eup %3064 }
 0x49a   :  { %v1380_v50 = vmul.f32 %v3065_v49, %v1379_v48 }
 0x49c   :  { %v1382_v52 = vadd.f32 %v1381_v51, %v1380_v50 }
 0x49e   :  { %2722 = vmatmul.mubr.msk.f32.vlgmr.msra.gmra.mrb[14].mxu1 %vm147_vm0, %v1382_v52  ;;  %2733 = vmatmul.mubr.msk.f32.vlgmr.msra.gmra.mrb[16].mxu0 %vm147_vm0, %v1382_v52 }
 0x49f   :  { %2955 = vmatpush3.bf16.msra.mxu1 %v3510_v35  ;;  %2743 = vmatprep.mubr.msk.f32.mxu1 %vm3302_vm1, %v3303_v29 }
 0x4a0   :  { %2956 = vmatprep.subr.bf16.mxu1 %v3301_v23  ;;  %2961 = vmatpush3.bf16.msra.mxu0 %v3493_v21 }
 0x4a1   :  { %2962 = vmatprep.subr.bf16.mxu0 %v3301_v23  ;;  %2754 = vmatprep.mubr.msk.f32.mxu0 %vm3302_vm1, %v3303_v29 }
 0x4a3   :  { %2958 = vmatpush3.bf16.msra.mxu1 %v3521_v39 }
 0x4a4   :  { %2965 = vmatprep.subr.bf16.mxu1 %v3301_v23  ;;  %2964 = vmatpush3.bf16.msra.mxu0 %v3499_v26 }
 0x4a5   :  { %2971 = vmatprep.subr.bf16.mxu0 %v3301_v23 }
 0x4a6   :  { %2744 = vmatmul.mubr.msk.f32.vlgmr.msra.gmra.mrb[16].mxu1 %vm147_vm0, %v1382_v52 }
 0x4a7   :  { %2967 = vmatpush3.bf16.msra.mxu1 %v3505_v32  ;;  %2765 = vmatprep.mubr.msk.f32.mxu1 %vm3302_vm1, %v3303_v29 }
 0x4a8   :  { %2968 = vmatprep.subr.bf16.mxu1 %v3301_v23 }
 0x4ab   :  { %2970 = vmatpush3.bf16.msra.mxu1 %v3515_v38 }
 0x4ac   :  { %2977 = vmatprep.subr.bf16.mxu1 %v3301_v23 }
 0x571   :  { %v1458_v54 = vpop.f32.mrb[14].mxu1  ;;  %v1528_v55 = vpop.f32.mrb[16].mxu0 }
 0x572   :  { %v1602_v56 = vadd.f32 %v1458_v54, %v1384_v53  ;;  %v2723_v57 = vpop.f32.mrb[15].mxu1  ;;  %v2734_v58 = vpop.f32.mrb[17].mxu0  ;;  %v1609_v61 = vadd.f32 %v1528_v55, %v1386_v60 }
 0x573   :  { %v1866_v57 = vld [vmem:[#allocation3 + $0xc] sm:$0x3] }
 0x574   :  { %v2393_v59 = vmul.f32 -1.442695, %v1602_v56  ;;  %v2394_v62 = vmul.f32 -1.442695, %v1609_v61 }
 0x576   :  { %3066 = vpow2.f32 %v2393_v59 }
 0x577   :  { %3068 = vpow2.f32 %v2394_v62 }
 0x579   :  { %v1598_v63 = vpop.f32.mrb[16].mxu1 }
 0x57a   :  { %v2745_v0 = vpop.f32.mrb[17].mxu1  ;;  %v1599_v5 = vadd.f32 %v3562_v6, %v1598_v63 }
 0x580   :  { %v3067_v1 = vpop.eup %3066 }
 0x581   :  { %v1606_v2 = vadd.f32 1.0, %v3067_v1  ;;  %v3069_v3 = vpop.eup %3068 }
 0x582   :  { %v1613_v4 = vadd.f32 1.0, %v3069_v3  ;;  %v1868_v3 = vld [vmem:[#allocation4 + $0xc] sm:$0x3] }
 0x583   :  { %3070 = vrcp.f32 %v1606_v2 }
 0x584   :  { %3072 = vrcp.f32 %v1613_v4 }
 0x58d   :  { %v3071_v7 = vpop.eup %3070 }
 0x58e   :  { %v1616_v8 = vmul.f32 %v3071_v7, %v1599_v5  ;;  %v3073_v11 = vpop.eup %3072 }
 0x58f   :  { %v1619_v12 = vsub.f32 1.0, %v3073_v11  ;;  %v1621_v15 = vmul.f32 %v3073_v11, %v1382_v52 }
 0x590   :  { %v1617_v10 = vadd.f32 %v1616_v8, %v1388_v9 }
 0x592   :  { %3074 = vtanh.f32 %v1617_v10 }
 0x59c   :  { %v3075_v13 = vpop.eup %3074 }
 0x59d   :  { %v1620_v14 = vmul.f32 %v3075_v13, %v1619_v12  ;;  %v2104_v12 = vld [vmem:[#allocation2 + $0xe] sm:$0x3] }
 0x59f   :  { %v1622_v16 = vadd.f32 %v1621_v15, %v1620_v14 }
 0x5a1   :  { %2755 = vmatmul.mubr.msk.f32.vlgmr.msra.gmra.mrb[18].mxu0 %vm147_vm0, %v1622_v16  ;;  %2766 = vmatmul.mubr.msk.f32.vlgmr.msra.gmra.mrb[18].mxu1 %vm147_vm0, %v1622_v16 }
 0x5a2   :  { %2973 = vmatpush3.bf16.msra.mxu0 %v3510_v35  ;;  %2776 = vmatprep.mubr.msk.f32.mxu0 %vm3302_vm1, %v3303_v29 }
 0x5a3   :  { %2974 = vmatprep.subr.bf16.mxu0 %v3301_v23  ;;  %2979 = vmatpush3.bf16.msra.mxu1 %v3493_v21 }
 0x5a4   :  { %2980 = vmatprep.subr.bf16.mxu1 %v3301_v23  ;;  %2787 = vmatprep.mubr.msk.f32.mxu1 %vm3302_vm1, %v3303_v29 }
 0x5a6   :  { %2976 = vmatpush3.bf16.msra.mxu0 %v3521_v39 }
 0x5a7   :  { %2983 = vmatprep.subr.bf16.mxu0 %v3301_v23  ;;  %2982 = vmatpush3.bf16.msra.mxu1 %v3499_v26 }
 0x5a8   :  { %2989 = vmatprep.subr.bf16.mxu1 %v3301_v23 }
 0x5a9   :  { %2777 = vmatmul.mubr.msk.f32.vlgmr.msra.gmra.mrb[20].mxu0 %vm147_vm0, %v1622_v16 }
 0x5aa   :  { %2985 = vmatpush3.bf16.msra.mxu0 %v3505_v32  ;;  %2798 = vmatprep.mubr.msk.f32.mxu0 %vm3302_vm1, %v3303_v29 }
 0x5ab   :  { %2986 = vmatprep.subr.bf16.mxu0 %v3301_v23 }
 0x5ae   :  { %2988 = vmatpush3.bf16.msra.mxu0 %v3515_v38 }
 0x5af   :  { %2995 = vmatprep.subr.bf16.mxu0 %v3301_v23 }
 0x674   :  { %v1698_v18 = vpop.f32.mrb[18].mxu0  ;;  %v1768_v19 = vpop.f32.mrb[18].mxu1 }
 0x675   :  { %v1842_v20 = vadd.f32 %v1698_v18, %v1624_v17  ;;  %v2756_v22 = vpop.f32.mrb[19].mxu0  ;;  %v2767_v24 = vpop.f32.mrb[19].mxu1  ;;  %v1849_v28 = vadd.f32 %v1768_v19, %v1626_v27  ;;  %v2106_v19 = vld [vmem:[#allocation3 + $0xe] sm:$0x3] }
 0x677   :  { %v2398_v25 = vmul.f32 -1.442695, %v1842_v20  ;;  %v2399_v30 = vmul.f32 -1.442695, %v1849_v28 }
 0x679   :  { %3076 = vpow2.f32 %v2398_v25 }
 0x67a   :  { %3078 = vpow2.f32 %v2399_v30 }
 0x67c   :  { %v1838_v31 = vpop.f32.mrb[20].mxu0 }
 0x67d   :  { %v2778_v33 = vpop.f32.mrb[21].mxu0  ;;  %v1839_v41 = vadd.f32 %v3562_v6, %v1838_v31  ;;  %v2108_v31 = vld [vmem:[#allocation4 + $0xe] sm:$0x3] }
 0x683   :  { %v3077_v34 = vpop.eup %3076 }
 0x684   :  { %v1846_v36 = vadd.f32 1.0, %v3077_v34  ;;  %v3079_v37 = vpop.eup %3078 }
 0x685   :  { %v1853_v40 = vadd.f32 1.0, %v3079_v37 }
 0x686   :  { %3080 = vrcp.f32 %v1846_v36 }
 0x687   :  { %3082 = vrcp.f32 %v1853_v40 }
 0x690   :  { %v3081_v42 = vpop.eup %3080 }
 0x691   :  { %v1856_v43 = vmul.f32 %v3081_v42, %v1839_v41  ;;  %v3083_v46 = vpop.eup %3082 }
 0x692   :  { %v1859_v47 = vsub.f32 1.0, %v3083_v46  ;;  %v1861_v50 = vmul.f32 %v3083_v46, %v1622_v16 }
 0x693   :  { %v1857_v45 = vadd.f32 %v1856_v43, %v1628_v44 }
 0x695   :  { %3084 = vtanh.f32 %v1857_v45 }
 0x69f   :  { %v3085_v48 = vpop.eup %3084 }
 0x6a0   :  { %v1860_v49 = vmul.f32 %v3085_v48, %v1859_v47 }
 0x6a2   :  { %v1862_v51 = vadd.f32 %v1861_v50, %v1860_v49 }
 0x6a4   :  { %2788 = vmatmul.mubr.msk.f32.vlgmr.msra.gmra.mrb[20].mxu1 %vm147_vm0, %v1862_v51  ;;  %2799 = vmatmul.mubr.msk.f32.vlgmr.msra.gmra.mrb[22].mxu0 %vm147_vm0, %v1862_v51 }
 0x6a5   :  { %2991 = vmatpush3.bf16.msra.mxu1 %v3510_v35  ;;  %2809 = vmatprep.mubr.msk.f32.mxu1 %vm3302_vm1, %v3303_v29 }
 0x6a6   :  { %2992 = vmatprep.subr.bf16.mxu1 %v3301_v23  ;;  %2997 = vmatpush3.bf16.msra.mxu0 %v3493_v21  ;;  %v1864_v21 = vld [vmem:[#allocation2 + $0xc] sm:$0x3] }
 0x6a7   :  { %2998 = vmatprep.subr.bf16.mxu0 %v3301_v23  ;;  %2820 = vmatprep.mubr.msk.f32.mxu0 %vm3302_vm1, %v3303_v29 }
 0x6a9   :  { %2994 = vmatpush3.bf16.msra.mxu1 %v3521_v39 }
 0x6aa   :  { %3001 = vmatprep.subr.bf16.mxu1 %v3301_v23  ;;  %3000 = vmatpush3.bf16.msra.mxu0 %v3499_v26 }
 0x6ab   :  { %3007 = vmatprep.subr.bf16.mxu0 %v3301_v23 }
 0x6ac   :  { %2810 = vmatmul.mubr.msk.f32.vlgmr.msra.gmra.mrb[22].mxu1 %vm147_vm0, %v1862_v51 }
 0x6ad   :  { %3003 = vmatpush3.bf16.msra.mxu1 %v3505_v32  ;;  %2831 = vmatprep.mubr.msk.f32.mxu1 %vm3302_vm1, %v3303_v29 }
 0x6ae   :  { %3004 = vmatprep.subr.bf16.mxu1 %v3301_v23 }
 0x6b1   :  { %3006 = vmatpush3.bf16.msra.mxu1 %v3515_v38 }
 0x777   :  { %v1938_v52 = vpop.f32.mrb[20].mxu1  ;;  %v2008_v53 = vpop.f32.mrb[22].mxu0 }
 0x778   :  { %v2082_v54 = vadd.f32 %v1938_v52, %v1864_v21  ;;  %v2789_v55 = vpop.f32.mrb[21].mxu1  ;;  %v2800_v56 = vpop.f32.mrb[23].mxu0  ;;  %v2089_v58 = vadd.f32 %v2008_v53, %v1866_v57 }
 0x77a   :  { %v2403_v26 = vmul.f32 -1.442695, %v2082_v54  ;;  %v2404_v59 = vmul.f32 -1.442695, %v2089_v58 }
 0x77c   :  { %3086 = vpow2.f32 %v2403_v26 }
 0x77d   :  { %3088 = vpow2.f32 %v2404_v59 }
 0x77f   :  { %v2078_v60 = vpop.f32.mrb[22].mxu1 }
 0x780   :  { %v2811_v32 = vpop.f32.mrb[23].mxu1  ;;  %v2079_v38 = vadd.f32 %v3562_v6, %v2078_v60 }
 0x786   :  { %v3087_v61 = vpop.eup %3086 }
 0x787   :  { %v2086_v62 = vadd.f32 1.0, %v3087_v61  ;;  %v3089_v63 = vpop.eup %3088 }
 0x788   :  { %v2093_v0 = vadd.f32 1.0, %v3089_v63 }
 0x789   :  { %3090 = vrcp.f32 %v2086_v62 }
 0x78a   :  { %3092 = vrcp.f32 %v2093_v0 }
 0x793   :  { %v3091_v1 = vpop.eup %3090 }
 0x794   :  { %v2096_v2 = vmul.f32 %v3091_v1, %v2079_v38  ;;  %v3093_v5 = vpop.eup %3092 }
 0x795   :  { %v2099_v7 = vsub.f32 1.0, %v3093_v5  ;;  %v2101_v10 = vmul.f32 %v3093_v5, %v1862_v51 }
 0x796   :  { %v2097_v4 = vadd.f32 %v2096_v2, %v1868_v3 }
 0x798   :  { %3094 = vtanh.f32 %v2097_v4 }
 0x7a2   :  { %v3095_v8 = vpop.eup %3094 }
 0x7a3   :  { %v2100_v9 = vmul.f32 %v3095_v8, %v2099_v7 }
 0x7a5   :  { %v2102_v11 = vadd.f32 %v2101_v10, %v2100_v9 }
 0x7a7   :  { %2821 = vmatmul.mubr.msk.f32.vlgmr.msra.gmra.mrb[24].mxu0 %vm147_vm0, %v2102_v11  ;;  %2832 = vmatmul.mubr.msk.f32.vlgmr.msra.gmra.mrb[24].mxu1 %vm147_vm0, %v2102_v11 }
 0x7a8   :  { %3009 = vmatpush3.bf16.msra.mxu0 %v3510_v35  ;;  %2842 = vmatprep.mubr.msk.f32.mxu0 %vm3302_vm1, %v3303_v29 }
 0x7a9   :  { %3010 = vmatprep.subr.bf16.mxu0 %v3301_v23 }
 0x7ac   :  { %3012 = vmatpush3.bf16.msra.mxu0 %v3521_v39 }
 0x7af   :  { %2843 = vmatmul.mubr.msk.f32.vlgmr.msra.gmra.mrb[26].mxu0 %vm147_vm0, %v2102_v11 }
 0x87a   :  { %v2178_v13 = vpop.f32.mrb[24].mxu0  ;;  %v2248_v14 = vpop.f32.mrb[24].mxu1 }
 0x87b   :  { %v2322_v15 = vadd.f32 %v2178_v13, %v2104_v12  ;;  %v2822_v16 = vpop.f32.mrb[25].mxu0  ;;  %v2833_v17 = vpop.f32.mrb[25].mxu1  ;;  %v2329_v20 = vadd.f32 %v2248_v14, %v2106_v19 }
 0x87d   :  { %v2408_v18 = vmul.f32 -1.442695, %v2322_v15  ;;  %v2409_v35 = vmul.f32 -1.442695, %v2329_v20 }
 0x87f   :  { %3096 = vpow2.f32 %v2408_v18 }
 0x880   :  { %3098 = vpow2.f32 %v2409_v35 }
 0x882   :  { %v2318_v22 = vpop.f32.mrb[26].mxu0 }
 0x883   :  { %v2844_v24 = vpop.f32.mrb[27].mxu0  ;;  %v2319_v27 = vadd.f32 %v3562_v6, %v2318_v22 }
 0x889   :  { %v3097_v29 = vpop.eup %3096 }
 0x88a   :  { %v2326_v23 = vadd.f32 1.0, %v3097_v29  ;;  %v3099_v39 = vpop.eup %3098 }
 0x88b   :  { %v2333_v25 = vadd.f32 1.0, %v3099_v39 }
 0x88c   :  { %3100 = vrcp.f32 %v2326_v23 }
 0x88d   :  { %3102 = vrcp.f32 %v2333_v25 }
 0x896   :  { %v3101_v28 = vpop.eup %3100 }
 0x897   :  { %v2336_v30 = vmul.f32 %v3101_v28, %v2319_v27  ;;  %v3103_v34 = vpop.eup %3102 }
 0x898   :  { %v2339_v36 = vsub.f32 1.0, %v3103_v34  ;;  %v2341_v41 = vmul.f32 %v3103_v34, %v2102_v11 }
 0x899   :  { %v2337_v33 = vadd.f32 %v2336_v30, %v2108_v31 }
 0x89b   :  { %3104 = vtanh.f32 %v2337_v33 }
 0x8a5   :  { %v3105_v37 = vpop.eup %3104 }
 0x8a6   :  { %v2340_v40 = vmul.f32 %v3105_v37, %v2339_v36 }
 0x8a8   :  { %v2342_v42 = vadd.f32 %v2341_v41, %v2340_v40 }
 0x8aa   :  { %2344 = vst.msk [vmem:[#allocation17] sm:$0x3] %vm2343_vm2, %v2342_v42 }
 0x8ab   :  { %3271 = shalt.err (!%p3268_p4)
}
 0x8ac   :  { %s3272_s5 = scalar_lea.hbm %s3728_s11, 32 }
 0x8ad   :  { %p3273_p5 = scmp.ne.s32.totalorder %s3728_s11, %s3272_s5  ;;  %p3276_p6 = scmp.lt.u32.totalorder %s3272_s5, %s3728_s11 }
 0x8af   :  { %p3278_p7 = pnand %p3276_p6, %p3273_p5 }
 0x8b1   :  { %3281 = shalt.err (!%p3278_p7)
}
 0x8b2   :  { %2354 = dma.vmem_to_hbm [thread:$0]  %s2352_s18, 32, %s3728_s11, [#allocation7]  }
 0x8b3   :  { %3290 = dma.done.wait [#allocation7], 32  }
 0x8b4   :  { %3291 = vsyncadd [#allocation7], 4294967264 }
 0x8b5   :  { %2358 = vsyncpa [#allocation6], 1 }
 0x8b6   :  { %2359 = vsyncpa [#allocation9], 1 }
 0x8b7   :  { %2360 = vsyncpa [#allocation12], 1 }
 0x8b8   :  { %2361 = vsyncpa [#allocation15], 1 }
 0x8b9   :  { %2362 = vsyncpa [#allocation7], 1 }

</bundles_post_ra>
